<compile_context>
chip_gen: v7x
topology: tpu7x:2x2x1
jax: 0.10.0
libtpu: 0.0.40
codegen_flags: <defaults>
</compile_context>

<pallas_src>
import jax
import jax.numpy as jnp
from jax import lax
from jax.experimental import pallas as pl
from jax.experimental.pallas import tpu as pltpu

HID = 128  # every hidden activation is padded out to 128 lanes


def reservoir_kernel(x_ref,
                     w1_ref, b1_ref,
                     w2_ref, b2_ref,
                     w3_ref,
                     w4t_ref,
                     o_ref):
    cdt = w1_ref.dtype  # matmul operand dtype (bf16 or f32); accumulation is f32.

    # ---- Linear(D, 128) + bias + ReLU  (BN1 scale/shift folded into next layer) ----
    h = jnp.dot(x_ref[...].astype(cdt), w1_ref[...],
                preferred_element_type=jnp.float32)
    h = jnp.maximum(h + b1_ref[...], 0.0)

    # ---- BN1-folded Linear(128, 64 -> padded 128) + bias + ReLU.
    #      b2's bias vector also sets lane 127 to 1.0, establishing the constant-one
    #      lane used to fold b3/b4 into the following matmuls. ----
    h = jnp.dot(h.astype(cdt), w2_ref[...], preferred_element_type=jnp.float32)
    h = jnp.maximum(h + b2_ref[...], 0.0)

    # ---- BN2-folded Linear(64, 32 -> padded 128) + ReLU.
    #      b3 lives in row 127 of w3 (multiplied by the constant-one lane), so no
    #      bias-add pass is needed; lane 127 of the output stays exactly 1.0. ----
    h = jnp.dot(h.astype(cdt), w3_ref[...], preferred_element_type=jnp.float32)
    h = jnp.maximum(h, 0.0)

    # ---- Linear(32 -> padded 128, 1), transposed orientation without materializing
    #      h.T: contract the last dims -> (8, tile_b); row 0 is the answer.
    #      b4 sits in w4t[0, 127] and is picked up by the constant-one lane. ----
    out = lax.dot_general(w4t_ref[...], h,
                          dimension_numbers=(((1,), (1,)), ((), ())),
                          preferred_element_type=jnp.float32)
    o_ref[...] = out[0:1, :][None, :, :]      # (1, 1, tile_b) unmasked lane-dense store


def _round_up(n, m):
    return ((n + m - 1) // m) * m


def _pick_tile_b(B, cap):
    """Adaptive batch tile: multiple of 128, big enough to amortize the ~0.35us
    per-grid-step overhead, small enough for every generation's scoped VMEM."""
    t = min(_round_up(max(B, 1), 512), cap)
    # "parallel" grid axes only shard across v7x's 2 TensorCores when num_tiles >= 2;
    # for big-enough batches prefer two half tiles (one extra ~0.35us step on v5e/v6e).
    if B >= 1024 and pl.cdiv(B, t) < 2:
        t = max(_round_up(pl.cdiv(B, 2), 128), 128)
    return t


def reservoir_net(x, params, *, tile_b=None, tile_cap=4096):
    """x: (B, D) float32 (or bfloat16).  params: output of prepare_params.
    Returns (B, 1) float32."""
    B, D = x.shape
    if tile_b is None:
        tile_b = _pick_tile_b(B, tile_cap)
    assert tile_b % 128 == 0, "tile_b must be a multiple of 128 (lane-dense tiles)"

    num_tiles = pl.cdiv(B, tile_b)
    Bp = num_tiles * tile_b
    if Bp != B:                               # masked tail via zero padding
        x = jnp.pad(x, ((0, Bp - B), (0, 0)))

    def const_spec(a):
        # Constant index_map -> block stays resident in VMEM across the grid.
        return pl.BlockSpec(a.shape, lambda i: (0,) * a.ndim)

    args = (x,
            params["w1"], params["b1"],
            params["w2"], params["b2"],
            params["w3"],
            params["w4t"])
    in_specs = [pl.BlockSpec((tile_b, D), lambda i: (i, 0))]
    in_specs += [const_spec(a) for a in args[1:]]

    # Advisory cost estimate: three MXU layers + tiny head; x is the only HBM stream.
    flops = int(2 * Bp * (D * HID + HID * HID + HID * HID + HID * 8))
    bytes_accessed = int(Bp * (D * x.dtype.itemsize + 4)
                         + sum(int(a.size) * int(a.dtype.itemsize) for a in args[1:]))

    out3 = pl.pallas_call(
        reservoir_kernel,
        out_shape=jax.ShapeDtypeStruct((num_tiles, 1, tile_b), jnp.float32),
        grid_spec=pltpu.PrefetchScalarGridSpec(
            num_scalar_prefetch=0,
            grid=(num_tiles,),
            in_specs=in_specs,
            out_specs=pl.BlockSpec((1, 1, tile_b), lambda i: (i, 0, 0)),
        ),
        compiler_params=pltpu.CompilerParams(
            dimension_semantics=("parallel",)),
        cost_estimate=pl.CostEstimate(flops=flops, transcendentals=0,
                                      bytes_accessed=bytes_accessed),
    )(*args)

    # (num_tiles, 1, tile_b) rows are batch-major -> flatten, drop padding.
    return out3.reshape(Bp, 1)[:B]


def prepare_params(p, compute_dtype=jnp.bfloat16):
    """One-time constant fold:
      * BN1/BN2 folded into the following Linear,
      * hidden dims zero-padded to 128 lanes,
      * lane 127 of the (padded) layer-2/3 outputs reserved as a constant-one lane so
        b3 folds into row 127 of w3 and b4 into w4t[0,127] (no in-kernel add),
      * matmul weights cast to compute_dtype (bf16 by default); b1/b2/w4t stay f32."""
    f32 = jnp.float32

    # Fold BN1 into Linear2:  (relu1*s1 + t1) @ W2 + b2 = relu1 @ (s1^T*W2) + (b2 + t1@W2)
    w2f = p["w2"] * p["s1"].T
    b2f = p["b2"] + p["t1"] @ p["w2"]
    # Fold BN2 into Linear3.
    w3f = p["w3"] * p["s2"].T
    b3f = p["b3"] + p["t2"] @ p["w3"]

    # Zero-pad 64 -> 128.  Lane 127 of the layer-2 output is pinned to 1.0 via the
    # bias (relu(0 + 1) = 1); w2p column 127 stays 0 so nothing else lands there.
    w2p = jnp.zeros((HID, HID), f32).at[:, :64].set(w2f)
    b2p = jnp.zeros((1, HID), f32).at[:, :64].set(b2f).at[0, 127].set(1.0)

    # Zero-pad 32 -> 128.  Row 127 carries b3 (multiplied by the constant-one lane);
    # w3p[127,127]=1 keeps lane 127 of the layer-3 output equal to exactly 1.0.
    w3p = (jnp.zeros((HID, HID), f32)
           .at[:64, :32].set(w3f)
           .at[127, :32].set(b3f[0])
           .at[127, 127].set(1.0))

    # Final layer stored transposed (8,128): row 0 = [w4^T, 0..0, b4], rows 1..7 zero.
    w4t = (jnp.zeros((8, HID), f32)
           .at[0, :32].set(p["w4"][:, 0])
           .at[0, 127].set(p["b4"][0, 0]))

    return dict(
        w1=p["w1"].astype(compute_dtype), b1=p["b1"].astype(f32),
        w2=w2p.astype(compute_dtype),     b2=b2p,
        w3=w3p.astype(compute_dtype),
        w4t=w4t,
    )


def init_params(key, input_dim):
    """Deterministic synthetic parameters matching ReservoirNet(__init__) shapes."""
    ks = jax.random.split(key, 12)
    eps = 1e-5

    def linear(kw, kb, fan_in, fan_out):
        bound = 1.0 / jnp.sqrt(fan_in)
        w = jax.random.uniform(kw, (fan_in, fan_out), jnp.float32, -bound, bound)
        b = jax.random.uniform(kb, (1, fan_out), jnp.float32, -bound, bound)
        return w, b

    w1, b1 = linear(ks[0], ks[1], input_dim, 128)
    w2, b2 = linear(ks[2], ks[3], 128, 64)
    w3, b3 = linear(ks[4], ks[5], 64, 32)
    w4, b4 = linear(ks[6], ks[7], 32, 1)

    def bn_fold(kg, kb, n):
        gamma = 1.0 + 0.1 * jax.random.normal(kg, (1, n), jnp.float32)
        beta = 0.1 * jax.random.normal(kb, (1, n), jnp.float32)
        running_mean = jnp.zeros((1, n), jnp.float32)   # PyTorch default init
        running_var = jnp.ones((1, n), jnp.float32)     # PyTorch default init
        scale = gamma / jnp.sqrt(running_var + eps)
        shift = beta - running_mean * scale
        return scale, shift

    s1, t1 = bn_fold(ks[8], ks[9], 128)
    s2, t2 = bn_fold(ks[10], ks[11], 64)

    return dict(w1=w1, b1=b1, s1=s1, t1=t1,
                w2=w2, b2=b2, s2=s2, t2=t2,
                w3=w3, b3=b3, w4=w4, b4=b4)


def reference(x, p):
    """Pure-JAX reference of the original (unfolded, unpadded) forward pass."""
    h = jnp.maximum(x @ p["w1"] + p["b1"], 0.0) * p["s1"] + p["t1"]
    h = jnp.maximum(h @ p["w2"] + p["b2"], 0.0) * p["s2"] + p["t2"]
    h = jnp.maximum(h @ p["w3"] + p["b3"], 0.0)
    return h @ p["w4"] + p["b4"]


if __name__ == "__main__":
    key = jax.random.PRNGKey(0)
    k_x, k_x2, k_p = jax.random.split(key, 3)

    D = 16
    raw = init_params(k_p, D)

    # TODO(synk): training-mode BatchNorm (batch statistics) and Dropout(0.2) RNG
    # masking are not implemented; this kernel reproduces inference semantics.

    # --- f32 operand path, adaptive (single) tile, small batch padded up ---
    x = jax.random.normal(k_x, (8, D), jnp.float32)
    p32 = prepare_params(raw, compute_dtype=jnp.float32)
    out = jax.block_until_ready(reservoir_net(x, p32))
    ref = reference(x, raw)
    assert out.shape == (8, 1)
    assert jnp.allclose(out, ref, atol=1e-3, rtol=1e-3), "f32 mismatch vs reference"

    # --- multi-tile + ragged batch (forces a >1 grid to exercise tiling/padding) ---
    x2 = jax.random.normal(k_x2, (200, D), jnp.float32)
    out2 = jax.block_until_ready(reservoir_net(x2, p32, tile_b=128))
    ref2 = reference(x2, raw)
    assert out2.shape == (200, 1)
    assert jnp.allclose(out2, ref2, atol=1e-3, rtol=1e-3), "multi-tile mismatch"

    # --- default bf16 operand path (f32 accumulation & epilogue), adaptive tile ---
    pbf = prepare_params(raw)   # compute_dtype defaults to bfloat16
    outb = jax.block_until_ready(reservoir_net(x2, pbf))
    assert outb.shape == (200, 1)
    assert jnp.allclose(outb, ref2, atol=5e-2, rtol=5e-2), "bf16 mismatch"

    print("KERNEL_OK")
</pallas_src>

<mosaic_0001>
module attributes {stable_mosaic.version = 11 : i64} {
  func.func @reservoir_kernel(%arg0: i32, %arg1: memref<512x16xf32, #tpu.memory_space<vmem>>, %arg2: memref<16x128xf32, #tpu.memory_space<vmem>>, %arg3: memref<1x128xf32, #tpu.memory_space<vmem>>, %arg4: memref<128x128xf32, #tpu.memory_space<vmem>>, %arg5: memref<1x128xf32, #tpu.memory_space<vmem>>, %arg6: memref<128x128xf32, #tpu.memory_space<vmem>>, %arg7: memref<8x128xf32, #tpu.memory_space<vmem>>, %arg8: memref<1x1x512xf32, #tpu.memory_space<vmem>>) attributes {dimension_semantics = [#tpu.dimension_semantics<parallel>], iteration_bounds = array<i64: 1>, scalar_prefetch = 0 : i64, scratch_operands = 0 : i64, tpu.core_type = #tpu.core_type<tc>, window_params = [{transform_indices = @transform_0, window_bounds = array<i64: 512, 16>}, {pipeline_mode = #tpu.pipeline_mode<synchronous>, transform_indices = @transform_1, window_bounds = array<i64: 16, 128>}, {pipeline_mode = #tpu.pipeline_mode<synchronous>, transform_indices = @transform_2, window_bounds = array<i64: 1, 128>}, {pipeline_mode = #tpu.pipeline_mode<synchronous>, transform_indices = @transform_3, window_bounds = array<i64: 128, 128>}, {pipeline_mode = #tpu.pipeline_mode<synchronous>, transform_indices = @transform_4, window_bounds = array<i64: 1, 128>}, {pipeline_mode = #tpu.pipeline_mode<synchronous>, transform_indices = @transform_5, window_bounds = array<i64: 128, 128>}, {pipeline_mode = #tpu.pipeline_mode<synchronous>, transform_indices = @transform_6, window_bounds = array<i64: 8, 128>}, {transform_indices = @transform_7, window_bounds = array<i64: 1, 1, 512>}]} {
    %c0 = arith.constant 0 : index
    %c0_0 = arith.constant 0 : index
    %0 = vector.load %arg1[%c0, %c0_0] : memref<512x16xf32, #tpu.memory_space<vmem>>, vector<512x16xf32>
    %c0_1 = arith.constant 0 : index
    %c0_2 = arith.constant 0 : index
    %1 = vector.load %arg2[%c0_1, %c0_2] : memref<16x128xf32, #tpu.memory_space<vmem>>, vector<16x128xf32>
    %cst = arith.constant dense<0.000000e+00> : vector<512x128xf32>
    %2 = tpu.matmul %0, %1, %cst {dimension_numbers = #tpu.dot_dimension_numbers<[1], [0], [0], [1], [0, 0, 1, 1], [], []>} : vector<512x16xf32>, vector<16x128xf32>, vector<512x128xf32> -> vector<512x128xf32>
    %c0_3 = arith.constant 0 : index
    %c0_4 = arith.constant 0 : index
    %3 = vector.load %arg3[%c0_3, %c0_4] : memref<1x128xf32, #tpu.memory_space<vmem>>, vector<1x128xf32>
    %4 = vector.broadcast %3 : vector<1x128xf32> to vector<512x128xf32>
    %5 = arith.addf %2, %4 : vector<512x128xf32>
    %cst_5 = arith.constant 0.000000e+00 : f32
    %6 = vector.broadcast %cst_5 : f32 to vector<512x128xf32>
    %7 = arith.maximumf %5, %6 : vector<512x128xf32>
    %c0_6 = arith.constant 0 : index
    %c0_7 = arith.constant 0 : index
    %8 = vector.load %arg4[%c0_6, %c0_7] : memref<128x128xf32, #tpu.memory_space<vmem>>, vector<128x128xf32>
    %cst_8 = arith.constant dense<0.000000e+00> : vector<512x128xf32>
    %9 = tpu.matmul %7, %8, %cst_8 {dimension_numbers = #tpu.dot_dimension_numbers<[1], [0], [0], [1], [0, 0, 1, 1], [], []>} : vector<512x128xf32>, vector<128x128xf32>, vector<512x128xf32> -> vector<512x128xf32>
    %c0_9 = arith.constant 0 : index
    %c0_10 = arith.constant 0 : index
    %10 = vector.load %arg5[%c0_9, %c0_10] : memref<1x128xf32, #tpu.memory_space<vmem>>, vector<1x128xf32>
    %11 = vector.broadcast %10 : vector<1x128xf32> to vector<512x128xf32>
    %12 = arith.addf %9, %11 : vector<512x128xf32>
    %cst_11 = arith.constant 0.000000e+00 : f32
    %13 = vector.broadcast %cst_11 : f32 to vector<512x128xf32>
    %14 = arith.maximumf %12, %13 : vector<512x128xf32>
    %c0_12 = arith.constant 0 : index
    %c0_13 = arith.constant 0 : index
    %15 = vector.load %arg6[%c0_12, %c0_13] : memref<128x128xf32, #tpu.memory_space<vmem>>, vector<128x128xf32>
    %cst_14 = arith.constant dense<0.000000e+00> : vector<512x128xf32>
    %16 = tpu.matmul %14, %15, %cst_14 {dimension_numbers = #tpu.dot_dimension_numbers<[1], [0], [0], [1], [0, 0, 1, 1], [], []>} : vector<512x128xf32>, vector<128x128xf32>, vector<512x128xf32> -> vector<512x128xf32>
    %cst_15 = arith.constant 0.000000e+00 : f32
    %17 = vector.broadcast %cst_15 : f32 to vector<512x128xf32>
    %18 = arith.maximumf %16, %17 : vector<512x128xf32>
    %c0_16 = arith.constant 0 : index
    %c0_17 = arith.constant 0 : index
    %19 = vector.load %arg7[%c0_16, %c0_17] : memref<8x128xf32, #tpu.memory_space<vmem>>, vector<8x128xf32>
    %cst_18 = arith.constant dense<0.000000e+00> : vector<8x512xf32>
    %20 = tpu.matmul %19, %18, %cst_18 {dimension_numbers = #tpu.dot_dimension_numbers<[1], [1], [0], [0], [0, 0, 1, 0], [], []>} : vector<8x128xf32>, vector<512x128xf32>, vector<8x512xf32> -> vector<8x512xf32>
    %21 = vector.extract_strided_slice %20 {offsets = [0, 0], sizes = [1, 512], strides = [1, 1]} : vector<8x512xf32> to vector<1x512xf32>
    %22 = vector.shape_cast %21 : vector<1x512xf32> to vector<1x1x512xf32>
    %c0_19 = arith.constant 0 : index
    %c0_20 = arith.constant 0 : index
    %c0_21 = arith.constant 0 : index
    %23 = vector.load %arg8[%c0_19, %c0_20, %c0_21] : memref<1x1x512xf32, #tpu.memory_space<vmem>>, vector<1x1x512xf32>
    tpu.vector_store %arg8[%c0_19, %c0_20, %c0_21], %22 {strides = array<i32>} : memref<1x1x512xf32, #tpu.memory_space<vmem>>, vector<1x1x512xf32>,
    return
  }
  func.func @transform_0(%arg0: i32) -> (i32, i32) {
    %c0_i32 = arith.constant 0 : i32
    %c0_i32_0 = arith.constant 0 : i32
    return %arg0, %c0_i32 : i32, i32
  }
  func.func @transform_1(%arg0: i32) -> (i32, i32) {
    %c0_i32 = arith.constant 0 : i32
    %c0_i32_0 = arith.constant 0 : i32
    %c0_i32_1 = arith.constant 0 : i32
    return %c0_i32, %c0_i32_0 : i32, i32
  }
  func.func @transform_2(%arg0: i32) -> (i32, i32) {
    %c0_i32 = arith.constant 0 : i32
    %c0_i32_0 = arith.constant 0 : i32
    %c0_i32_1 = arith.constant 0 : i32
    return %c0_i32, %c0_i32_0 : i32, i32
  }
  func.func @transform_3(%arg0: i32) -> (i32, i32) {
    %c0_i32 = arith.constant 0 : i32
    %c0_i32_0 = arith.constant 0 : i32
    %c0_i32_1 = arith.constant 0 : i32
    return %c0_i32, %c0_i32_0 : i32, i32
  }
  func.func @transform_4(%arg0: i32) -> (i32, i32) {
    %c0_i32 = arith.constant 0 : i32
    %c0_i32_0 = arith.constant 0 : i32
    %c0_i32_1 = arith.constant 0 : i32
    return %c0_i32, %c0_i32_0 : i32, i32
  }
  func.func @transform_5(%arg0: i32) -> (i32, i32) {
    %c0_i32 = arith.constant 0 : i32
    %c0_i32_0 = arith.constant 0 : i32
    %c0_i32_1 = arith.constant 0 : i32
    return %c0_i32, %c0_i32_0 : i32, i32
  }
  func.func @transform_6(%arg0: i32) -> (i32, i32) {
    %c0_i32 = arith.constant 0 : i32
    %c0_i32_0 = arith.constant 0 : i32
    %c0_i32_1 = arith.constant 0 : i32
    return %c0_i32, %c0_i32_0 : i32, i32
  }
  func.func @transform_7(%arg0: i32) -> (i32, i32, i32) {
    %c0_i32 = arith.constant 0 : i32
    %c0_i32_0 = arith.constant 0 : i32
    %c0_i32_1 = arith.constant 0 : i32
    return %arg0, %c0_i32, %c0_i32_0 : i32, i32, i32
  }
}

</mosaic_0001>

<bundles_post_ra>
// kernel: tpu_custom_call.1
= control target key start
LH: loop header
LB: loop body
LE: loop exit
PB: predicated region body
PF: predicated region fallthrough
CT: control target
= control target key end

     0   :  { %vm100_vm0 = vcmask 130048   ;;  %s3330_s0 = inlined_call_operand.vmem [shape: f32[512,16], index: 0, kind: input, shape index: {}]   ;;  %s3331_s1 = inlined_call_operand.vmem [shape: f32[16,128], index: 1, kind: input, shape index: {}]   ;;  %s3332_s2 = inlined_call_operand.vmem [shape: f32[1,128], index: 2, kind: input, shape index: {}]   ;;  %s3333_s3 = inlined_call_operand.vmem [shape: f32[128,128], index: 3, kind: input, shape index: {}]   ;;  %s3334_s4 = inlined_call_operand.vmem [shape: f32[1,128], index: 4, kind: input, shape index: {}]   ;;  %s3335_s5 = inlined_call_operand.vmem [shape: f32[128,128], index: 5, kind: input, shape index: {}]   ;;  %s3336_s6 = inlined_call_operand.vmem [shape: f32[8,128], index: 6, kind: input, shape index: {}]   ;;  %s3337_s7 = inlined_call_operand.hbm [shape: f32[1,1,512], index: 7, kind: output, shape index: {}]  }
   0x1   :  { %v91_v0 = vld [vmem:[%s3331_s1] sm:$0xff]  ;;  %v92_v1 = vld [vmem:[%s3331_s1 + $0x8] sm:$0xff]  ;;  %v29_v5 = vld [vmem:[%s3330_s0 + $0x10] sm:$0xff] }
   0x2   :  { %v27_v2 = vld [vmem:[%s3330_s0] sm:$0xff]  ;;  %v2586_v3 = vpack.c.bf16 %v92_v1, %v91_v0  ;;  %v28_v4 = vld [vmem:[%s3330_s0 + $0x8] sm:$0xff]  ;;  %v30_v6 = vld [vmem:[%s3330_s0 + $0x18] sm:$0xff] }
   0x3   :  { %2234 = vmatprep.mubr.msk.f32.mxu0 %vm100_vm0, %v27_v2  ;;  %v31_v7 = vld [vmem:[%s3330_s0 + $0x20] sm:$0xff]  ;;  %v32_v8 = vld [vmem:[%s3330_s0 + $0x28] sm:$0xff]  ;;  %v33_v9 = vld [vmem:[%s3330_s0 + $0x30] sm:$0xff] }
   0x4   :  { %2587 = vmatprep.subr.bf16.mxu0 %v2586_v3  ;;  %v34_v10 = vld [vmem:[%s3330_s0 + $0x38] sm:$0xff]  ;;  %v35_v11 = vld [vmem:[%s3330_s0 + $0x40] sm:$0xff]  ;;  %v36_v12 = vld [vmem:[%s3330_s0 + $0x48] sm:$0xff] }
   0x5   :  { %2589 = vmatpush3.bf16.msra.mxu0 %v2586_v3  ;;  %v37_v13 = vld [vmem:[%s3330_s0 + $0x50] sm:$0xff]  ;;  %v742_v14 = vld [vmem:[%s3333_s3] sm:$0xff]  ;;  %v743_v15 = vld [vmem:[%s3333_s3 + $0x8] sm:$0xff] }
   0x6   :  { %v744_v16 = vld [vmem:[%s3333_s3 + $0x10] sm:$0xff]  ;;  %v2590_v17 = vpack.c.bf16 %v743_v15, %v742_v14  ;;  %v745_v18 = vld [vmem:[%s3333_s3 + $0x18] sm:$0xff]  ;;  %v746_v21 = vld [vmem:[%s3333_s3 + $0x20] sm:$0xff] }
   0x7   :  { %v38_v19 = vld [vmem:[%s3330_s0 + $0x58] sm:$0xff]  ;;  %v2594_v20 = vpack.c.bf16 %v745_v18, %v744_v16  ;;  %v747_v22 = vld [vmem:[%s3333_s3 + $0x28] sm:$0xff]  ;;  %v39_v23 = vld [vmem:[%s3330_s0 + $0x60] sm:$0xff] }
   0x8   :  { %2235 = vmatmul.mubr.msk.f32.vlgmr.msra.gmra.mrb[0].mxu0 %vm100_vm0, %v28_v4  ;;  %2591 = vmatprep.subr.bf16.mxu1 %v2590_v17 }
   0x9   :  { %2237 = vmatprep.mubr.msk.f32.mxu0 %vm100_vm0, %v29_v5  ;;  %2593 = vmatpush3.bf16.msra.mxu1 %v2590_v17 }
   0xc   :  { %2238 = vmatmul.mubr.msk.f32.gmra.mrb[2].mxu0 %vm100_vm0, %v30_v6 }
   0xd   :  { %2240 = vmatprep.mubr.msk.f32.mxu0 %vm100_vm0, %v31_v7 }
  0x10   :  { %2241 = vmatmul.mubr.msk.f32.gmra.mrb[4].mxu0 %vm100_vm0, %v32_v8 }
  0x11   :  { %2243 = vmatprep.mubr.msk.f32.mxu0 %vm100_vm0, %v33_v9 }
  0x14   :  { %2244 = vmatmul.mubr.msk.f32.gmra.mrb[6].mxu0 %vm100_vm0, %v34_v10 }
  0x15   :  { %2246 = vmatprep.mubr.msk.f32.mxu0 %vm100_vm0, %v35_v11 }
  0x18   :  { %2247 = vmatmul.mubr.msk.f32.gmra.mrb[8].mxu0 %vm100_vm0, %v36_v12 }
  0x19   :  { %2249 = vmatprep.mubr.msk.f32.mxu0 %vm100_vm0, %v37_v13 }
  0x1a   :  { %12 = vsyncpa [#allocation3], 0  ;;  %2595 = vmatprep.subr.bf16.mxu1 %v2594_v20  ;;  %v2598_v24 = vpack.c.bf16 %v747_v22, %v746_v21  ;;  %v40_v25 = vld [vmem:[%s3330_s0 + $0x68] sm:$0xff]  ;;  %v748_v26 = vld [vmem:[%s3333_s3 + $0x30] sm:$0xff] }
  0x1b   :  { %v749_v27 = vld [vmem:[%s3333_s3 + $0x38] sm:$0xff]  ;;  %v41_v28 = vld [vmem:[%s3330_s0 + $0x70] sm:$0xff]  ;;  %2597 = vmatpush3.bf16.msra.mxu1 %v2594_v20  ;;  %v750_v31 = vld [vmem:[%s3333_s3 + $0x40] sm:$0xff] }
  0x1c   :  { %2250 = vmatmul.mubr.msk.f32.gmra.mrb[10].mxu0 %vm100_vm0, %v38_v19  ;;  %2599 = vmatprep.subr.bf16.mxu1 %v2598_v24  ;;  %v2602_v29 = vpack.c.bf16 %v749_v27, %v748_v26  ;;  %v42_v30 = vld [vmem:[%s3330_s0 + $0x78] sm:$0xff]  ;;  %v751_v32 = vld [vmem:[%s3333_s3 + $0x48] sm:$0xff]  ;;  %v43_v33 = vld [vmem:[%s3330_s0 + $0x80] sm:$0xff] }
  0x1d   :  { %2252 = vmatprep.mubr.msk.f32.mxu0 %vm100_vm0, %v39_v23  ;;  %v2606_v34 = vpack.c.bf16 %v751_v32, %v750_v31  ;;  %v44_v35 = vld [vmem:[%s3330_s0 + $0x88] sm:$0xff]  ;;  %v752_v36 = vld [vmem:[%s3333_s3 + $0x50] sm:$0xff]  ;;  %v753_v37 = vld [vmem:[%s3333_s3 + $0x58] sm:$0xff] }
  0x1e   :  { %v45_v38 = vld [vmem:[%s3330_s0 + $0x90] sm:$0xff]  ;;  %v2610_v39 = vpack.c.bf16 %v753_v37, %v752_v36  ;;  %v46_v40 = vld [vmem:[%s3330_s0 + $0x98] sm:$0xff]  ;;  %v754_v41 = vld [vmem:[%s3333_s3 + $0x60] sm:$0xff] }
  0x1f   :  { %2601 = vmatpush3.bf16.msra.mxu1 %v2598_v24  ;;  %v755_v42 = vld [vmem:[%s3333_s3 + $0x68] sm:$0xff]  ;;  %v47_v43 = vld [vmem:[%s3330_s0 + $0xa0] sm:$0xff]  ;;  %v49_v46 = vld [vmem:[%s3330_s0 + $0xb0] sm:$0xff] }
  0x20   :  { %2253 = vmatmul.mubr.msk.f32.gmra.mrb[12].mxu0 %vm100_vm0, %v40_v25  ;;  %2603 = vmatprep.subr.bf16.mxu1 %v2602_v29  ;;  %v2614_v44 = vpack.c.bf16 %v755_v42, %v754_v41  ;;  %v48_v45 = vld [vmem:[%s3330_s0 + $0xa8] sm:$0xff]  ;;  %v50_v47 = vld [vmem:[%s3330_s0 + $0xb8] sm:$0xff]  ;;  %v51_v48 = vld [vmem:[%s3330_s0 + $0xc0] sm:$0xff] }
  0x21   :  { %2255 = vmatprep.mubr.msk.f32.mxu0 %vm100_vm0, %v41_v28  ;;  %v52_v49 = vld [vmem:[%s3330_s0 + $0xc8] sm:$0xff]  ;;  %v53_v50 = vld [vmem:[%s3330_s0 + $0xd0] sm:$0xff]  ;;  %v54_v51 = vld [vmem:[%s3330_s0 + $0xd8] sm:$0xff] }
  0x22   :  { %v55_v52 = vld [vmem:[%s3330_s0 + $0xe0] sm:$0xff]  ;;  %v56_v53 = vld [vmem:[%s3330_s0 + $0xe8] sm:$0xff]  ;;  %v57_v54 = vld [vmem:[%s3330_s0 + $0xf0] sm:$0xff] }
  0x23   :  { %2605 = vmatpush3.bf16.msra.mxu1 %v2602_v29  ;;  %v58_v55 = vld [vmem:[%s3330_s0 + $0xf8] sm:$0xff]  ;;  %v59_v56 = vld [vmem:[%s3330_s0 + $0x100] sm:$0xff]  ;;  %v60_v57 = vld [vmem:[%s3330_s0 + $0x108] sm:$0xff] }
  0x24   :  { %2256 = vmatmul.mubr.msk.f32.gmra.mrb[14].mxu0 %vm100_vm0, %v42_v30  ;;  %2607 = vmatprep.subr.bf16.mxu1 %v2606_v34  ;;  %v61_v58 = vld [vmem:[%s3330_s0 + $0x110] sm:$0xff]  ;;  %v62_v59 = vld [vmem:[%s3330_s0 + $0x118] sm:$0xff]  ;;  %v63_v60 = vld [vmem:[%s3330_s0 + $0x120] sm:$0xff] }
  0x25   :  { %2258 = vmatprep.mubr.msk.f32.mxu0 %vm100_vm0, %v43_v33  ;;  %v64_v61 = vld [vmem:[%s3330_s0 + $0x128] sm:$0xff]  ;;  %v65_v62 = vld [vmem:[%s3330_s0 + $0x130] sm:$0xff]  ;;  %v66_v63 = vld [vmem:[%s3330_s0 + $0x138] sm:$0xff] }
  0x26   :  { %v67_v0 = vld [vmem:[%s3330_s0 + $0x140] sm:$0xff]  ;;  %v68_v1 = vld [vmem:[%s3330_s0 + $0x148] sm:$0xff]  ;;  %v69_v2 = vld [vmem:[%s3330_s0 + $0x150] sm:$0xff] }
  0x27   :  { %2609 = vmatpush3.bf16.msra.mxu1 %v2606_v34  ;;  %v70_v3 = vld [vmem:[%s3330_s0 + $0x158] sm:$0xff]  ;;  %v71_v4 = vld [vmem:[%s3330_s0 + $0x160] sm:$0xff]  ;;  %v756_v5 = vld [vmem:[%s3333_s3 + $0x70] sm:$0xff] }
  0x28   :  { %2259 = vmatmul.mubr.msk.f32.gmra.mrb[16].mxu0 %vm100_vm0, %v44_v35  ;;  %2611 = vmatprep.subr.bf16.mxu1 %v2610_v39  ;;  %v757_v6 = vld [vmem:[%s3333_s3 + $0x78] sm:$0xff]  ;;  %v72_v8 = vld [vmem:[%s3330_s0 + $0x168] sm:$0xff]  ;;  %v73_v9 = vld [vmem:[%s3330_s0 + $0x170] sm:$0xff] }
  0x29   :  { %2261 = vmatprep.mubr.msk.f32.mxu0 %vm100_vm0, %v45_v38  ;;  %v2618_v7 = vpack.c.bf16 %v757_v6, %v756_v5  ;;  %v74_v10 = vld [vmem:[%s3330_s0 + $0x178] sm:$0xff]  ;;  %v75_v11 = vld [vmem:[%s3330_s0 + $0x180] sm:$0xff]  ;;  %v76_v12 = vld [vmem:[%s3330_s0 + $0x188] sm:$0xff] }
  0x2a   :  { %v77_v13 = vld [vmem:[%s3330_s0 + $0x190] sm:$0xff]  ;;  %v78_v14 = vld [vmem:[%s3330_s0 + $0x198] sm:$0xff]  ;;  %v79_v15 = vld [vmem:[%s3330_s0 + $0x1a0] sm:$0xff] }
  0x2b   :  { %2613 = vmatpush3.bf16.msra.mxu1 %v2610_v39  ;;  %v80_v16 = vld [vmem:[%s3330_s0 + $0x1a8] sm:$0xff]  ;;  %v81_v17 = vld [vmem:[%s3330_s0 + $0x1b0] sm:$0xff]  ;;  %v82_v18 = vld [vmem:[%s3330_s0 + $0x1b8] sm:$0xff] }
  0x2c   :  { %2262 = vmatmul.mubr.msk.f32.gmra.mrb[18].mxu0 %vm100_vm0, %v46_v40  ;;  %2615 = vmatprep.subr.bf16.mxu1 %v2614_v44  ;;  %v83_v19 = vld [vmem:[%s3330_s0 + $0x1c0] sm:$0xff]  ;;  %v84_v20 = vld [vmem:[%s3330_s0 + $0x1c8] sm:$0xff]  ;;  %v85_v21 = vld [vmem:[%s3330_s0 + $0x1d0] sm:$0xff] }
  0x2d   :  { %2264 = vmatprep.mubr.msk.f32.mxu0 %vm100_vm0, %v47_v43  ;;  %v86_v22 = vld [vmem:[%s3330_s0 + $0x1d8] sm:$0xff]  ;;  %v87_v23 = vld [vmem:[%s3330_s0 + $0x1e0] sm:$0xff]  ;;  %v88_v24 = vld [vmem:[%s3330_s0 + $0x1e8] sm:$0xff] }
  0x2e   :  { %v89_v25 = vld [vmem:[%s3330_s0 + $0x1f0] sm:$0xff]  ;;  %v90_v26 = vld [vmem:[%s3330_s0 + $0x1f8] sm:$0xff]  ;;  %v3099_v27 = vld [vmem:[%s3332_s2] ss:$0 sm:$0xff] }
  0x2f   :  { %2617 = vmatpush3.bf16.msra.mxu1 %v2614_v44  ;;  %v1214_v32 = vld [vmem:[%s3335_s5] sm:$0xff]  ;;  %v1215_v33 = vld [vmem:[%s3335_s5 + $0x8] sm:$0xff]  ;;  %v1216_v34 = vld [vmem:[%s3335_s5 + $0x10] sm:$0xff] }
  0x30   :  { %2265 = vmatmul.mubr.msk.f32.gmra.mrb[20].mxu0 %vm100_vm0, %v48_v45  ;;  %2619 = vmatprep.subr.bf16.mxu1 %v2618_v7  ;;  %v2622_v37 = vpack.c.bf16 %v1215_v33, %v1214_v32  ;;  %v1217_v38 = vld [vmem:[%s3335_s5 + $0x18] sm:$0xff]  ;;  %v1218_v43 = vld [vmem:[%s3335_s5 + $0x20] sm:$0xff]  ;;  %v1219_v44 = vld [vmem:[%s3335_s5 + $0x28] sm:$0xff] }
  0x31   :  { %2267 = vmatprep.mubr.msk.f32.mxu0 %vm100_vm0, %v49_v46  ;;  %v2626_v42 = vpack.c.bf16 %v1217_v38, %v1216_v34  ;;  %v1224_v6 = vld [vmem:[%s3335_s5 + $0x50] sm:$0xff] }
  0x32   :  { %2623 = vmatprep.subr.bf16.mxu0 %v2622_v37 }
  0x33   :  { %2621 = vmatpush3.bf16.msra.mxu1 %v2618_v7  ;;  %2625 = vmatpush3.bf16.msra.mxu0 %v2622_v37  ;;  %v1225_v7 = vld [vmem:[%s3335_s5 + $0x58] sm:$0xff] }
  0x34   :  { %2268 = vmatmul.mubr.msk.f32.gmra.mrb[22].mxu0 %vm100_vm0, %v50_v47  ;;  %2627 = vmatprep.subr.bf16.mxu0 %v2626_v42 }
  0x35   :  { %2270 = vmatprep.mubr.msk.f32.mxu0 %vm100_vm0, %v51_v48  ;;  %v2630_v48 = vpack.c.bf16 %v1219_v44, %v1218_v43 }
  0x37   :  { %2629 = vmatpush3.bf16.msra.mxu0 %v2626_v42 }
  0x38   :  { %2271 = vmatmul.mubr.msk.f32.gmra.mrb[24].mxu0 %vm100_vm0, %v52_v49  ;;  %2631 = vmatprep.subr.bf16.mxu0 %v2630_v48 }
  0x39   :  { %2273 = vmatprep.mubr.msk.f32.mxu0 %vm100_vm0, %v53_v50 }
  0x3b   :  { %2633 = vmatpush3.bf16.msra.mxu0 %v2630_v48 }
  0x3c   :  { %2274 = vmatmul.mubr.msk.f32.gmra.mrb[26].mxu0 %vm100_vm0, %v54_v51 }
  0x3d   :  { %2276 = vmatprep.mubr.msk.f32.mxu0 %vm100_vm0, %v55_v52  ;;  %v1220_v52 = vld [vmem:[%s3335_s5 + $0x30] sm:$0xff] }
  0x40   :  { %2277 = vmatmul.mubr.msk.f32.gmra.mrb[28].mxu0 %vm100_vm0, %v56_v53  ;;  %v1221_v53 = vld [vmem:[%s3335_s5 + $0x38] sm:$0xff] }
  0x41   :  { %2279 = vmatprep.mubr.msk.f32.mxu0 %vm100_vm0, %v57_v54 }
  0x44   :  { %2280 = vmatmul.mubr.msk.f32.gmra.mrb[30].mxu0 %vm100_vm0, %v58_v55 }
  0x45   :  { %2282 = vmatprep.mubr.msk.f32.mxu0 %vm100_vm0, %v59_v56 }
  0x48   :  { %2283 = vmatmul.mubr.msk.f32.gmra.mrb[32].mxu0 %vm100_vm0, %v60_v57  ;;  %v2634_v57 = vpack.c.bf16 %v1221_v53, %v1220_v52 }
  0x49   :  { %2285 = vmatprep.mubr.msk.f32.mxu0 %vm100_vm0, %v61_v58 }
  0x4a   :  { %2635 = vmatprep.subr.bf16.mxu0 %v2634_v57 }
  0x4b   :  { %2637 = vmatpush3.bf16.msra.mxu0 %v2634_v57 }
  0x4c   :  { %2286 = vmatmul.mubr.msk.f32.gmra.mrb[34].mxu0 %vm100_vm0, %v62_v59 }
  0x4d   :  { %2288 = vmatprep.mubr.msk.f32.mxu0 %vm100_vm0, %v63_v60 }
  0x50   :  { %2289 = vmatmul.mubr.msk.f32.gmra.mrb[36].mxu0 %vm100_vm0, %v64_v61  ;;  %v1222_v61 = vld [vmem:[%s3335_s5 + $0x40] sm:$0xff] }
  0x51   :  { %2291 = vmatprep.mubr.msk.f32.mxu0 %vm100_vm0, %v65_v62  ;;  %v1223_v62 = vld [vmem:[%s3335_s5 + $0x48] sm:$0xff] }
  0x54   :  { %2292 = vmatmul.mubr.msk.f32.gmra.mrb[38].mxu0 %vm100_vm0, %v66_v63 }
  0x55   :  { %2294 = vmatprep.mubr.msk.f32.mxu0 %vm100_vm0, %v67_v0 }
  0x58   :  { %2295 = vmatmul.mubr.msk.f32.gmra.mrb[40].mxu0 %vm100_vm0, %v68_v1 }
  0x59   :  { %2297 = vmatprep.mubr.msk.f32.mxu0 %vm100_vm0, %v69_v2  ;;  %v2638_v2 = vpack.c.bf16 %v1223_v62, %v1222_v61 }
  0x5b   :  { %2639 = vmatprep.subr.bf16.mxu0 %v2638_v2 }
  0x5c   :  { %2298 = vmatmul.mubr.msk.f32.gmra.mrb[42].mxu0 %vm100_vm0, %v70_v3 }
  0x5d   :  { %2300 = vmatprep.mubr.msk.f32.mxu0 %vm100_vm0, %v71_v4  ;;  %2641 = vmatpush3.bf16.msra.mxu0 %v2638_v2 }
  0x60   :  { %2301 = vmatmul.mubr.msk.f32.gmra.mrb[44].mxu0 %vm100_vm0, %v72_v8 }
  0x61   :  { %2303 = vmatprep.mubr.msk.f32.mxu0 %vm100_vm0, %v73_v9 }
  0x64   :  { %2304 = vmatmul.mubr.msk.f32.gmra.mrb[46].mxu0 %vm100_vm0, %v74_v10 }
  0x65   :  { %2306 = vmatprep.mubr.msk.f32.mxu0 %vm100_vm0, %v75_v11  ;;  %v2642_v11 = vpack.c.bf16 %v1225_v7, %v1224_v6 }
  0x67   :  { %2643 = vmatprep.subr.bf16.mxu0 %v2642_v11 }
  0x68   :  { %2307 = vmatmul.mubr.msk.f32.gmra.mrb[48].mxu0 %vm100_vm0, %v76_v12 }
  0x69   :  { %2309 = vmatprep.mubr.msk.f32.mxu0 %vm100_vm0, %v77_v13  ;;  %2645 = vmatpush3.bf16.msra.mxu0 %v2642_v11 }
  0x6c   :  { %2310 = vmatmul.mubr.msk.f32.gmra.mrb[50].mxu0 %vm100_vm0, %v78_v14 }
  0x6d   :  { %2312 = vmatprep.mubr.msk.f32.mxu0 %vm100_vm0, %v79_v15  ;;  %v1226_v15 = vld [vmem:[%s3335_s5 + $0x60] sm:$0xff] }
  0x70   :  { %2313 = vmatmul.mubr.msk.f32.gmra.mrb[52].mxu0 %vm100_vm0, %v80_v16  ;;  %v1227_v16 = vld [vmem:[%s3335_s5 + $0x68] sm:$0xff] }
  0x71   :  { %2315 = vmatprep.mubr.msk.f32.mxu0 %vm100_vm0, %v81_v17 }
  0x74   :  { %2316 = vmatmul.mubr.msk.f32.gmra.mrb[54].mxu0 %vm100_vm0, %v82_v18 }
  0x75   :  { %2318 = vmatprep.mubr.msk.f32.mxu0 %vm100_vm0, %v83_v19 }
  0x78   :  { %2319 = vmatmul.mubr.msk.f32.gmra.mrb[56].mxu0 %vm100_vm0, %v84_v20  ;;  %v2646_v20 = vpack.c.bf16 %v1227_v16, %v1226_v15 }
  0x79   :  { %2321 = vmatprep.mubr.msk.f32.mxu0 %vm100_vm0, %v85_v21 }
  0x7a   :  { %2647 = vmatprep.subr.bf16.mxu0 %v2646_v20 }
  0x7b   :  { %2649 = vmatpush3.bf16.msra.mxu0 %v2646_v20 }
  0x7c   :  { %2322 = vmatmul.mubr.msk.f32.gmra.mrb[58].mxu0 %vm100_vm0, %v86_v22 }
  0x7d   :  { %2324 = vmatprep.mubr.msk.f32.mxu0 %vm100_vm0, %v87_v23 }
  0x80   :  { %2325 = vmatmul.mubr.msk.f32.gmra.mrb[60].mxu0 %vm100_vm0, %v88_v24 }
  0x81   :  { %2327 = vmatprep.mubr.msk.f32.mxu0 %vm100_vm0, %v89_v25 }
  0x84   :  { %2328 = vmatmul.mubr.msk.f32.gmra.mrb[62].mxu0 %vm100_vm0, %v90_v26 }
  0xdb   :  { %v2236_v28 = vpop.f32.mrb[0].mxu0 }
  0xdc   :  { %v365_v29 = vadd.f32 %v2236_v28, %v3099_v27  ;;  %v359_v30 = vpop.f32.mrb[1].mxu0 }
  0xdd   :  { %v360_v31 = vadd.f32 %v3099_v27, %v359_v30 }
  0xde   :  { %v679_v39 = vmax.f32 %v365_v29, 0.0 }
  0xdf   :  { %v2239_v35 = vpop.f32.mrb[2].mxu0  ;;  %v678_v36 = vmax.f32 %v360_v31, 0.0 }
  0xe0   :  { %v375_v40 = vadd.f32 %v2239_v35, %v3099_v27  ;;  %v369_v41 = vpop.f32.mrb[3].mxu0 }
  0xe1   :  { %v370_v45 = vadd.f32 %v3099_v27, %v369_v41  ;;  %2362 = vmatprep.mubr.f32.mxu1 %v678_v36 }
  0xe2   :  { %2363 = vmatmul.mubr.f32.vlgmr.msra.gmra.mrb[0].mxu1 %v679_v39  ;;  %v681_v49 = vmax.f32 %v375_v40, 0.0 }
  0xe3   :  { %v680_v46 = vmax.f32 %v370_v45, 0.0  ;;  %v2242_v47 = vpop.f32.mrb[4].mxu0 }
  0xe4   :  { %v385_v50 = vadd.f32 %v2242_v47, %v3099_v27  ;;  %v379_v51 = vpop.f32.mrb[5].mxu0 }
  0xe5   :  { %v380_v54 = vadd.f32 %v3099_v27, %v379_v51  ;;  %2365 = vmatprep.mubr.f32.mxu1 %v680_v46 }
  0xe6   :  { %2366 = vmatmul.mubr.f32.gmra.mrb[2].mxu1 %v681_v49  ;;  %v683_v58 = vmax.f32 %v385_v50, 0.0 }
  0xe7   :  { %v682_v55 = vmax.f32 %v380_v54, 0.0  ;;  %v2245_v56 = vpop.f32.mrb[6].mxu0 }
  0xe8   :  { %v395_v59 = vadd.f32 %v2245_v56, %v3099_v27  ;;  %v389_v60 = vpop.f32.mrb[7].mxu0 }
  0xe9   :  { %v390_v63 = vadd.f32 %v3099_v27, %v389_v60  ;;  %2368 = vmatprep.mubr.f32.mxu1 %v682_v55 }
  0xea   :  { %2369 = vmatmul.mubr.f32.gmra.mrb[4].mxu1 %v683_v58  ;;  %v685_v3 = vmax.f32 %v395_v59, 0.0 }
  0xeb   :  { %v684_v0 = vmax.f32 %v390_v63, 0.0  ;;  %v2248_v1 = vpop.f32.mrb[8].mxu0 }
  0xec   :  { %v405_v4 = vadd.f32 %v2248_v1, %v3099_v27  ;;  %v399_v5 = vpop.f32.mrb[9].mxu0 }
  0xed   :  { %v400_v8 = vadd.f32 %v3099_v27, %v399_v5  ;;  %2371 = vmatprep.mubr.f32.mxu1 %v684_v0 }
  0xee   :  { %2372 = vmatmul.mubr.f32.gmra.mrb[6].mxu1 %v685_v3  ;;  %v687_v12 = vmax.f32 %v405_v4, 0.0 }
  0xef   :  { %v686_v9 = vmax.f32 %v400_v8, 0.0  ;;  %v2251_v10 = vpop.f32.mrb[10].mxu0 }
  0xf0   :  { %v415_v13 = vadd.f32 %v2251_v10, %v3099_v27  ;;  %v409_v14 = vpop.f32.mrb[11].mxu0 }
  0xf1   :  { %v410_v17 = vadd.f32 %v3099_v27, %v409_v14  ;;  %2374 = vmatprep.mubr.f32.mxu1 %v686_v9 }
  0xf2   :  { %2375 = vmatmul.mubr.f32.gmra.mrb[8].mxu1 %v687_v12  ;;  %v689_v21 = vmax.f32 %v415_v13, 0.0 }
  0xf3   :  { %v688_v18 = vmax.f32 %v410_v17, 0.0  ;;  %v2254_v19 = vpop.f32.mrb[12].mxu0 }
  0xf4   :  { %v425_v22 = vadd.f32 %v2254_v19, %v3099_v27  ;;  %v419_v23 = vpop.f32.mrb[13].mxu0 }
  0xf5   :  { %v420_v24 = vadd.f32 %v3099_v27, %v419_v23  ;;  %2377 = vmatprep.mubr.f32.mxu1 %v688_v18 }
  0xf6   :  { %2378 = vmatmul.mubr.f32.gmra.mrb[10].mxu1 %v689_v21  ;;  %v691_v28 = vmax.f32 %v425_v22, 0.0 }
  0xf7   :  { %v690_v25 = vmax.f32 %v420_v24, 0.0  ;;  %v2257_v26 = vpop.f32.mrb[14].mxu0 }
  0xf8   :  { %v435_v29 = vadd.f32 %v2257_v26, %v3099_v27  ;;  %v429_v30 = vpop.f32.mrb[15].mxu0 }
  0xf9   :  { %v430_v31 = vadd.f32 %v3099_v27, %v429_v30  ;;  %2380 = vmatprep.mubr.f32.mxu1 %v690_v25 }
  0xfa   :  { %2381 = vmatmul.mubr.f32.gmra.mrb[12].mxu1 %v691_v28  ;;  %v693_v34 = vmax.f32 %v435_v29, 0.0 }
  0xfb   :  { %v692_v32 = vmax.f32 %v430_v31, 0.0  ;;  %v2260_v33 = vpop.f32.mrb[16].mxu0 }
  0xfc   :  { %v445_v35 = vadd.f32 %v2260_v33, %v3099_v27  ;;  %v439_v36 = vpop.f32.mrb[17].mxu0 }
  0xfd   :  { %v440_v37 = vadd.f32 %v3099_v27, %v439_v36  ;;  %2383 = vmatprep.mubr.f32.mxu1 %v692_v32 }
  0xfe   :  { %2384 = vmatmul.mubr.f32.gmra.mrb[14].mxu1 %v693_v34  ;;  %v695_v40 = vmax.f32 %v445_v35, 0.0 }
  0xff   :  { %v694_v38 = vmax.f32 %v440_v37, 0.0  ;;  %v2263_v39 = vpop.f32.mrb[18].mxu0 }
 0x100   :  { %v455_v41 = vadd.f32 %v2263_v39, %v3099_v27  ;;  %v449_v42 = vpop.f32.mrb[19].mxu0 }
 0x101   :  { %v450_v43 = vadd.f32 %v3099_v27, %v449_v42  ;;  %2386 = vmatprep.mubr.f32.mxu1 %v694_v38 }
 0x102   :  { %2387 = vmatmul.mubr.f32.gmra.mrb[16].mxu1 %v695_v40  ;;  %v697_v46 = vmax.f32 %v455_v41, 0.0 }
 0x103   :  { %v696_v44 = vmax.f32 %v450_v43, 0.0  ;;  %v2266_v45 = vpop.f32.mrb[20].mxu0 }
 0x104   :  { %v465_v47 = vadd.f32 %v2266_v45, %v3099_v27  ;;  %v459_v48 = vpop.f32.mrb[21].mxu0 }
 0x105   :  { %v460_v49 = vadd.f32 %v3099_v27, %v459_v48  ;;  %2389 = vmatprep.mubr.f32.mxu1 %v696_v44 }
 0x106   :  { %2390 = vmatmul.mubr.f32.gmra.mrb[18].mxu1 %v697_v46  ;;  %v699_v52 = vmax.f32 %v465_v47, 0.0 }
 0x107   :  { %v698_v50 = vmax.f32 %v460_v49, 0.0  ;;  %v2269_v51 = vpop.f32.mrb[22].mxu0 }
 0x108   :  { %v475_v53 = vadd.f32 %v2269_v51, %v3099_v27  ;;  %v469_v54 = vpop.f32.mrb[23].mxu0 }
 0x109   :  { %v470_v55 = vadd.f32 %v3099_v27, %v469_v54  ;;  %2392 = vmatprep.mubr.f32.mxu1 %v698_v50 }
 0x10a   :  { %2393 = vmatmul.mubr.f32.gmra.mrb[20].mxu1 %v699_v52  ;;  %v701_v58 = vmax.f32 %v475_v53, 0.0 }
 0x10b   :  { %v700_v56 = vmax.f32 %v470_v55, 0.0  ;;  %v2272_v57 = vpop.f32.mrb[24].mxu0 }
 0x10c   :  { %v485_v59 = vadd.f32 %v2272_v57, %v3099_v27  ;;  %v479_v60 = vpop.f32.mrb[25].mxu0 }
 0x10d   :  { %v480_v61 = vadd.f32 %v3099_v27, %v479_v60  ;;  %2395 = vmatprep.mubr.f32.mxu1 %v700_v56  ;;  %v1229_v60 = vld [vmem:[%s3335_s5 + $0x78] sm:$0xff] }
 0x10e   :  { %2396 = vmatmul.mubr.f32.gmra.mrb[22].mxu1 %v701_v58  ;;  %v703_v0 = vmax.f32 %v485_v59, 0.0  ;;  %v1228_v59 = vld [vmem:[%s3335_s5 + $0x70] sm:$0xff] }
 0x10f   :  { %v702_v62 = vmax.f32 %v480_v61, 0.0  ;;  %v2275_v63 = vpop.f32.mrb[26].mxu0  ;;  %v2650_v61 = vpack.c.bf16 %v1229_v60, %v1228_v59 }
 0x110   :  { %v495_v1 = vadd.f32 %v2275_v63, %v3099_v27  ;;  %v489_v2 = vpop.f32.mrb[27].mxu0 }
 0x111   :  { %v490_v3 = vadd.f32 %v3099_v27, %v489_v2  ;;  %2398 = vmatprep.mubr.f32.mxu1 %v702_v62  ;;  %2651 = vmatprep.subr.bf16.mxu0 %v2650_v61 }
 0x112   :  { %2399 = vmatmul.mubr.f32.gmra.mrb[24].mxu1 %v703_v0  ;;  %v705_v6 = vmax.f32 %v495_v1, 0.0  ;;  %2653 = vmatpush3.bf16.msra.mxu0 %v2650_v61 }
 0x113   :  { %v704_v4 = vmax.f32 %v490_v3, 0.0  ;;  %v2278_v5 = vpop.f32.mrb[28].mxu0 }
 0x114   :  { %v505_v7 = vadd.f32 %v2278_v5, %v3099_v27  ;;  %v499_v8 = vpop.f32.mrb[29].mxu0 }
 0x115   :  { %v500_v9 = vadd.f32 %v3099_v27, %v499_v8  ;;  %2401 = vmatprep.mubr.f32.mxu1 %v704_v4 }
 0x116   :  { %2402 = vmatmul.mubr.f32.gmra.mrb[26].mxu1 %v705_v6  ;;  %v707_v12 = vmax.f32 %v505_v7, 0.0 }
 0x117   :  { %v706_v10 = vmax.f32 %v500_v9, 0.0  ;;  %v2281_v11 = vpop.f32.mrb[30].mxu0 }
 0x118   :  { %v515_v13 = vadd.f32 %v2281_v11, %v3099_v27  ;;  %v509_v14 = vpop.f32.mrb[31].mxu0 }
 0x119   :  { %v510_v15 = vadd.f32 %v3099_v27, %v509_v14  ;;  %2404 = vmatprep.mubr.f32.mxu1 %v706_v10 }
 0x11a   :  { %2405 = vmatmul.mubr.f32.gmra.mrb[28].mxu1 %v707_v12  ;;  %v709_v18 = vmax.f32 %v515_v13, 0.0 }
 0x11b   :  { %v708_v16 = vmax.f32 %v510_v15, 0.0  ;;  %v2284_v17 = vpop.f32.mrb[32].mxu0 }
 0x11c   :  { %v525_v19 = vadd.f32 %v2284_v17, %v3099_v27  ;;  %v519_v20 = vpop.f32.mrb[33].mxu0 }
 0x11d   :  { %v520_v21 = vadd.f32 %v3099_v27, %v519_v20  ;;  %2407 = vmatprep.mubr.f32.mxu1 %v708_v16 }
 0x11e   :  { %2408 = vmatmul.mubr.f32.gmra.mrb[30].mxu1 %v709_v18  ;;  %v711_v24 = vmax.f32 %v525_v19, 0.0 }
 0x11f   :  { %v710_v22 = vmax.f32 %v520_v21, 0.0  ;;  %v2287_v23 = vpop.f32.mrb[34].mxu0 }
 0x120   :  { %v535_v25 = vadd.f32 %v2287_v23, %v3099_v27  ;;  %v529_v26 = vpop.f32.mrb[35].mxu0 }
 0x121   :  { %v530_v28 = vadd.f32 %v3099_v27, %v529_v26  ;;  %2410 = vmatprep.mubr.f32.mxu1 %v710_v22 }
 0x122   :  { %2411 = vmatmul.mubr.f32.gmra.mrb[32].mxu1 %v711_v24  ;;  %v713_v31 = vmax.f32 %v535_v25, 0.0 }
 0x123   :  { %v712_v29 = vmax.f32 %v530_v28, 0.0  ;;  %v2290_v30 = vpop.f32.mrb[36].mxu0 }
 0x124   :  { %v545_v32 = vadd.f32 %v2290_v30, %v3099_v27  ;;  %v539_v33 = vpop.f32.mrb[37].mxu0 }
 0x125   :  { %v540_v34 = vadd.f32 %v3099_v27, %v539_v33  ;;  %2413 = vmatprep.mubr.f32.mxu1 %v712_v29 }
 0x126   :  { %2414 = vmatmul.mubr.f32.gmra.mrb[34].mxu1 %v713_v31  ;;  %v715_v37 = vmax.f32 %v545_v32, 0.0 }
 0x127   :  { %v714_v35 = vmax.f32 %v540_v34, 0.0  ;;  %v2293_v36 = vpop.f32.mrb[38].mxu0 }
 0x128   :  { %v555_v38 = vadd.f32 %v2293_v36, %v3099_v27  ;;  %v549_v39 = vpop.f32.mrb[39].mxu0 }
 0x129   :  { %v550_v40 = vadd.f32 %v3099_v27, %v549_v39  ;;  %2416 = vmatprep.mubr.f32.mxu1 %v714_v35 }
 0x12a   :  { %2417 = vmatmul.mubr.f32.gmra.mrb[36].mxu1 %v715_v37  ;;  %v717_v43 = vmax.f32 %v555_v38, 0.0 }
 0x12b   :  { %v716_v41 = vmax.f32 %v550_v40, 0.0  ;;  %v2296_v42 = vpop.f32.mrb[40].mxu0 }
 0x12c   :  { %v565_v44 = vadd.f32 %v2296_v42, %v3099_v27  ;;  %v559_v45 = vpop.f32.mrb[41].mxu0 }
 0x12d   :  { %v560_v46 = vadd.f32 %v3099_v27, %v559_v45  ;;  %2419 = vmatprep.mubr.f32.mxu1 %v716_v41 }
 0x12e   :  { %2420 = vmatmul.mubr.f32.gmra.mrb[38].mxu1 %v717_v43  ;;  %v719_v49 = vmax.f32 %v565_v44, 0.0 }
 0x12f   :  { %v718_v47 = vmax.f32 %v560_v46, 0.0  ;;  %v2299_v48 = vpop.f32.mrb[42].mxu0 }
 0x130   :  { %v575_v50 = vadd.f32 %v2299_v48, %v3099_v27  ;;  %v569_v51 = vpop.f32.mrb[43].mxu0 }
 0x131   :  { %v570_v52 = vadd.f32 %v3099_v27, %v569_v51  ;;  %2422 = vmatprep.mubr.f32.mxu1 %v718_v47 }
 0x132   :  { %2423 = vmatmul.mubr.f32.gmra.mrb[40].mxu1 %v719_v49  ;;  %v721_v55 = vmax.f32 %v575_v50, 0.0 }
 0x133   :  { %v720_v53 = vmax.f32 %v570_v52, 0.0  ;;  %v2302_v54 = vpop.f32.mrb[44].mxu0 }
 0x134   :  { %v585_v56 = vadd.f32 %v2302_v54, %v3099_v27  ;;  %v579_v57 = vpop.f32.mrb[45].mxu0 }
 0x135   :  { %v580_v58 = vadd.f32 %v3099_v27, %v579_v57  ;;  %2425 = vmatprep.mubr.f32.mxu1 %v720_v53 }
 0x136   :  { %2426 = vmatmul.mubr.f32.gmra.mrb[42].mxu1 %v721_v55  ;;  %v723_v0 = vmax.f32 %v585_v56, 0.0  ;;  %v3216_v55 = vld [vmem:[%s3334_s4] ss:$0 sm:$0xff] }
 0x137   :  { %v722_v62 = vmax.f32 %v580_v58, 0.0  ;;  %v2305_v63 = vpop.f32.mrb[46].mxu0 }
 0x138   :  { %v595_v1 = vadd.f32 %v2305_v63, %v3099_v27  ;;  %v589_v2 = vpop.f32.mrb[47].mxu0 }
 0x139   :  { %v590_v3 = vadd.f32 %v3099_v27, %v589_v2  ;;  %2428 = vmatprep.mubr.f32.mxu1 %v722_v62 }
 0x13a   :  { %2429 = vmatmul.mubr.f32.gmra.mrb[44].mxu1 %v723_v0  ;;  %v725_v6 = vmax.f32 %v595_v1, 0.0 }
 0x13b   :  { %v724_v4 = vmax.f32 %v590_v3, 0.0  ;;  %v2308_v5 = vpop.f32.mrb[48].mxu0 }
 0x13c   :  { %v605_v7 = vadd.f32 %v2308_v5, %v3099_v27  ;;  %v599_v8 = vpop.f32.mrb[49].mxu0 }
 0x13d   :  { %v600_v9 = vadd.f32 %v3099_v27, %v599_v8  ;;  %2431 = vmatprep.mubr.f32.mxu1 %v724_v4 }
 0x13e   :  { %2432 = vmatmul.mubr.f32.gmra.mrb[46].mxu1 %v725_v6  ;;  %v727_v12 = vmax.f32 %v605_v7, 0.0 }
 0x13f   :  { %v726_v10 = vmax.f32 %v600_v9, 0.0  ;;  %v2311_v11 = vpop.f32.mrb[50].mxu0 }
 0x140   :  { %v615_v13 = vadd.f32 %v2311_v11, %v3099_v27  ;;  %v609_v14 = vpop.f32.mrb[51].mxu0 }
 0x141   :  { %2434 = vmatprep.mubr.f32.mxu1 %v726_v10  ;;  %v610_v15 = vadd.f32 %v3099_v27, %v609_v14 }
 0x142   :  { %2435 = vmatmul.mubr.f32.gmra.mrb[48].mxu1 %v727_v12  ;;  %v729_v16 = vmax.f32 %v615_v13, 0.0 }
 0x143   :  { %v728_v17 = vmax.f32 %v610_v15, 0.0  ;;  %v2314_v18 = vpop.f32.mrb[52].mxu0 }
 0x144   :  { %v625_v19 = vadd.f32 %v2314_v18, %v3099_v27  ;;  %v619_v20 = vpop.f32.mrb[53].mxu0 }
 0x145   :  { %2437 = vmatprep.mubr.f32.mxu1 %v728_v17  ;;  %v620_v21 = vadd.f32 %v3099_v27, %v619_v20 }
 0x146   :  { %2438 = vmatmul.mubr.f32.gmra.mrb[50].mxu1 %v729_v16  ;;  %v731_v22 = vmax.f32 %v625_v19, 0.0 }
 0x147   :  { %v730_v23 = vmax.f32 %v620_v21, 0.0  ;;  %v2317_v24 = vpop.f32.mrb[54].mxu0 }
 0x148   :  { %v635_v25 = vadd.f32 %v2317_v24, %v3099_v27  ;;  %v629_v26 = vpop.f32.mrb[55].mxu0 }
 0x149   :  { %2440 = vmatprep.mubr.f32.mxu1 %v730_v23  ;;  %v630_v28 = vadd.f32 %v3099_v27, %v629_v26 }
 0x14a   :  { %2441 = vmatmul.mubr.f32.gmra.mrb[52].mxu1 %v731_v22  ;;  %v733_v29 = vmax.f32 %v635_v25, 0.0 }
 0x14b   :  { %v732_v30 = vmax.f32 %v630_v28, 0.0  ;;  %v2320_v31 = vpop.f32.mrb[56].mxu0 }
 0x14c   :  { %v645_v32 = vadd.f32 %v2320_v31, %v3099_v27  ;;  %v639_v33 = vpop.f32.mrb[57].mxu0 }
 0x14d   :  { %2443 = vmatprep.mubr.f32.mxu1 %v732_v30  ;;  %v640_v34 = vadd.f32 %v3099_v27, %v639_v33 }
 0x14e   :  { %2444 = vmatmul.mubr.f32.gmra.mrb[54].mxu1 %v733_v29  ;;  %v735_v35 = vmax.f32 %v645_v32, 0.0 }
 0x14f   :  { %v734_v36 = vmax.f32 %v640_v34, 0.0  ;;  %v2323_v37 = vpop.f32.mrb[58].mxu0 }
 0x150   :  { %v655_v38 = vadd.f32 %v2323_v37, %v3099_v27  ;;  %v649_v39 = vpop.f32.mrb[59].mxu0 }
 0x151   :  { %2446 = vmatprep.mubr.f32.mxu1 %v734_v36  ;;  %v650_v40 = vadd.f32 %v3099_v27, %v649_v39 }
 0x152   :  { %2447 = vmatmul.mubr.f32.gmra.mrb[56].mxu1 %v735_v35  ;;  %v737_v41 = vmax.f32 %v655_v38, 0.0 }
 0x153   :  { %v736_v42 = vmax.f32 %v650_v40, 0.0  ;;  %v2326_v43 = vpop.f32.mrb[60].mxu0 }
 0x154   :  { %v665_v44 = vadd.f32 %v2326_v43, %v3099_v27  ;;  %v659_v45 = vpop.f32.mrb[61].mxu0 }
 0x155   :  { %2449 = vmatprep.mubr.f32.mxu1 %v736_v42  ;;  %v660_v46 = vadd.f32 %v3099_v27, %v659_v45 }
 0x156   :  { %2450 = vmatmul.mubr.f32.gmra.mrb[58].mxu1 %v737_v41  ;;  %v739_v47 = vmax.f32 %v665_v44, 0.0 }
 0x157   :  { %v738_v48 = vmax.f32 %v660_v46, 0.0  ;;  %v2329_v49 = vpop.f32.mrb[62].mxu0 }
 0x158   :  { %v675_v50 = vadd.f32 %v2329_v49, %v3099_v27  ;;  %v669_v51 = vpop.f32.mrb[63].mxu0 }
 0x159   :  { %2452 = vmatprep.mubr.f32.mxu1 %v738_v48  ;;  %v670_v52 = vadd.f32 %v3099_v27, %v669_v51 }
 0x15a   :  { %2453 = vmatmul.mubr.f32.gmra.mrb[60].mxu1 %v739_v47  ;;  %v741_v53 = vmax.f32 %v675_v50, 0.0 }
 0x15b   :  { %v740_v54 = vmax.f32 %v670_v52, 0.0 }
 0x15d   :  { %2455 = vmatprep.mubr.f32.mxu1 %v740_v54 }
 0x15e   :  { %2456 = vmatmul.mubr.f32.gmra.mrb[62].mxu1 %v741_v53 }
 0x1b5   :  { %v2364_v56 = vpop.f32.mrb[0].mxu1 }
 0x1b6   :  { %v837_v57 = vadd.f32 %v2364_v56, %v3216_v55  ;;  %v831_v58 = vpop.f32.mrb[1].mxu1 }
 0x1b7   :  { %v832_v59 = vadd.f32 %v3216_v55, %v831_v58 }
 0x1b8   :  { %v1151_v62 = vmax.f32 %v837_v57, 0.0 }
 0x1b9   :  { %v1150_v60 = vmax.f32 %v832_v59, 0.0  ;;  %v2367_v61 = vpop.f32.mrb[2].mxu1 }
 0x1ba   :  { %v847_v27 = vadd.f32 %v2367_v61, %v3216_v55  ;;  %v841_v63 = vpop.f32.mrb[3].mxu1 }
 0x1bb   :  { %v842_v0 = vadd.f32 %v3216_v55, %v841_v63  ;;  %2490 = vmatprep.mubr.f32.mxu0 %v1150_v60 }
 0x1bc   :  { %2491 = vmatmul.mubr.f32.vlgmr.msra.gmra.mrb[64].mxu0 %v1151_v62  ;;  %v1153_v3 = vmax.f32 %v847_v27, 0.0 }
 0x1bd   :  { %v1152_v1 = vmax.f32 %v842_v0, 0.0  ;;  %v2370_v2 = vpop.f32.mrb[4].mxu1 }
 0x1be   :  { %v857_v4 = vadd.f32 %v2370_v2, %v3216_v55  ;;  %v851_v5 = vpop.f32.mrb[5].mxu1 }
 0x1bf   :  { %v852_v6 = vadd.f32 %v3216_v55, %v851_v5  ;;  %2493 = vmatprep.mubr.f32.mxu0 %v1152_v1 }
 0x1c0   :  { %2494 = vmatmul.mubr.f32.gmra.mrb[66].mxu0 %v1153_v3  ;;  %v1155_v9 = vmax.f32 %v857_v4, 0.0 }
 0x1c1   :  { %v1154_v7 = vmax.f32 %v852_v6, 0.0  ;;  %v2373_v8 = vpop.f32.mrb[6].mxu1 }
 0x1c2   :  { %v867_v10 = vadd.f32 %v2373_v8, %v3216_v55  ;;  %v861_v11 = vpop.f32.mrb[7].mxu1 }
 0x1c3   :  { %v862_v12 = vadd.f32 %v3216_v55, %v861_v11  ;;  %2496 = vmatprep.mubr.f32.mxu0 %v1154_v7 }
 0x1c4   :  { %2497 = vmatmul.mubr.f32.gmra.mrb[68].mxu0 %v1155_v9  ;;  %v1157_v15 = vmax.f32 %v867_v10, 0.0 }
 0x1c5   :  { %v1156_v13 = vmax.f32 %v862_v12, 0.0  ;;  %v2376_v14 = vpop.f32.mrb[8].mxu1 }
 0x1c6   :  { %v877_v16 = vadd.f32 %v2376_v14, %v3216_v55  ;;  %v871_v17 = vpop.f32.mrb[9].mxu1 }
 0x1c7   :  { %v872_v18 = vadd.f32 %v3216_v55, %v871_v17  ;;  %2499 = vmatprep.mubr.f32.mxu0 %v1156_v13 }
 0x1c8   :  { %2500 = vmatmul.mubr.f32.gmra.mrb[70].mxu0 %v1157_v15  ;;  %v1159_v21 = vmax.f32 %v877_v16, 0.0 }
 0x1c9   :  { %v1158_v19 = vmax.f32 %v872_v18, 0.0  ;;  %v2379_v20 = vpop.f32.mrb[10].mxu1 }
 0x1ca   :  { %v887_v22 = vadd.f32 %v2379_v20, %v3216_v55  ;;  %v881_v23 = vpop.f32.mrb[11].mxu1 }
 0x1cb   :  { %v882_v24 = vadd.f32 %v3216_v55, %v881_v23  ;;  %2502 = vmatprep.mubr.f32.mxu0 %v1158_v19 }
 0x1cc   :  { %2503 = vmatmul.mubr.f32.gmra.mrb[72].mxu0 %v1159_v21  ;;  %v1161_v28 = vmax.f32 %v887_v22, 0.0 }
 0x1cd   :  { %v1160_v25 = vmax.f32 %v882_v24, 0.0  ;;  %v2382_v26 = vpop.f32.mrb[12].mxu1 }
 0x1ce   :  { %v897_v29 = vadd.f32 %v2382_v26, %v3216_v55  ;;  %v891_v30 = vpop.f32.mrb[13].mxu1 }
 0x1cf   :  { %v892_v31 = vadd.f32 %v3216_v55, %v891_v30  ;;  %2505 = vmatprep.mubr.f32.mxu0 %v1160_v25 }
 0x1d0   :  { %2506 = vmatmul.mubr.f32.gmra.mrb[74].mxu0 %v1161_v28  ;;  %v1163_v34 = vmax.f32 %v897_v29, 0.0 }
 0x1d1   :  { %v1162_v32 = vmax.f32 %v892_v31, 0.0  ;;  %v2385_v33 = vpop.f32.mrb[14].mxu1 }
 0x1d2   :  { %v907_v35 = vadd.f32 %v2385_v33, %v3216_v55  ;;  %v901_v36 = vpop.f32.mrb[15].mxu1 }
 0x1d3   :  { %v902_v37 = vadd.f32 %v3216_v55, %v901_v36  ;;  %2508 = vmatprep.mubr.f32.mxu0 %v1162_v32 }
 0x1d4   :  { %2509 = vmatmul.mubr.f32.gmra.mrb[76].mxu0 %v1163_v34  ;;  %v1165_v40 = vmax.f32 %v907_v35, 0.0 }
 0x1d5   :  { %v1164_v38 = vmax.f32 %v902_v37, 0.0  ;;  %v2388_v39 = vpop.f32.mrb[16].mxu1 }
 0x1d6   :  { %v917_v41 = vadd.f32 %v2388_v39, %v3216_v55  ;;  %v911_v42 = vpop.f32.mrb[17].mxu1 }
 0x1d7   :  { %v912_v43 = vadd.f32 %v3216_v55, %v911_v42  ;;  %2511 = vmatprep.mubr.f32.mxu0 %v1164_v38 }
 0x1d8   :  { %2512 = vmatmul.mubr.f32.gmra.mrb[78].mxu0 %v1165_v40  ;;  %v1167_v46 = vmax.f32 %v917_v41, 0.0 }
 0x1d9   :  { %v1166_v44 = vmax.f32 %v912_v43, 0.0  ;;  %v2391_v45 = vpop.f32.mrb[18].mxu1 }
 0x1da   :  { %v927_v47 = vadd.f32 %v2391_v45, %v3216_v55  ;;  %v921_v48 = vpop.f32.mrb[19].mxu1 }
 0x1db   :  { %v922_v49 = vadd.f32 %v3216_v55, %v921_v48  ;;  %2514 = vmatprep.mubr.f32.mxu0 %v1166_v44 }
 0x1dc   :  { %2515 = vmatmul.mubr.f32.gmra.mrb[80].mxu0 %v1167_v46  ;;  %v1169_v52 = vmax.f32 %v927_v47, 0.0 }
 0x1dd   :  { %v1168_v50 = vmax.f32 %v922_v49, 0.0  ;;  %v2394_v51 = vpop.f32.mrb[20].mxu1 }
 0x1de   :  { %v937_v53 = vadd.f32 %v2394_v51, %v3216_v55  ;;  %v931_v54 = vpop.f32.mrb[21].mxu1 }
 0x1df   :  { %v932_v56 = vadd.f32 %v3216_v55, %v931_v54  ;;  %2517 = vmatprep.mubr.f32.mxu0 %v1168_v50 }
 0x1e0   :  { %2518 = vmatmul.mubr.f32.gmra.mrb[82].mxu0 %v1169_v52  ;;  %v1171_v59 = vmax.f32 %v937_v53, 0.0 }
 0x1e1   :  { %v1170_v57 = vmax.f32 %v932_v56, 0.0  ;;  %v2397_v58 = vpop.f32.mrb[22].mxu1 }
 0x1e2   :  { %v947_v60 = vadd.f32 %v2397_v58, %v3216_v55  ;;  %v941_v61 = vpop.f32.mrb[23].mxu1 }
 0x1e3   :  { %v942_v62 = vadd.f32 %v3216_v55, %v941_v61  ;;  %2520 = vmatprep.mubr.f32.mxu0 %v1170_v57 }
 0x1e4   :  { %2521 = vmatmul.mubr.f32.gmra.mrb[84].mxu0 %v1171_v59  ;;  %v1173_v0 = vmax.f32 %v947_v60, 0.0 }
 0x1e5   :  { %v1172_v27 = vmax.f32 %v942_v62, 0.0  ;;  %v2400_v63 = vpop.f32.mrb[24].mxu1 }
 0x1e6   :  { %v957_v1 = vadd.f32 %v2400_v63, %v3216_v55  ;;  %v951_v2 = vpop.f32.mrb[25].mxu1 }
 0x1e7   :  { %v952_v3 = vadd.f32 %v3216_v55, %v951_v2  ;;  %2523 = vmatprep.mubr.f32.mxu0 %v1172_v27 }
 0x1e8   :  { %2524 = vmatmul.mubr.f32.gmra.mrb[86].mxu0 %v1173_v0  ;;  %v1175_v6 = vmax.f32 %v957_v1, 0.0 }
 0x1e9   :  { %v1174_v4 = vmax.f32 %v952_v3, 0.0  ;;  %v2403_v5 = vpop.f32.mrb[26].mxu1 }
 0x1ea   :  { %v967_v7 = vadd.f32 %v2403_v5, %v3216_v55  ;;  %v961_v8 = vpop.f32.mrb[27].mxu1 }
 0x1eb   :  { %v962_v9 = vadd.f32 %v3216_v55, %v961_v8  ;;  %2526 = vmatprep.mubr.f32.mxu0 %v1174_v4 }
 0x1ec   :  { %2527 = vmatmul.mubr.f32.gmra.mrb[88].mxu0 %v1175_v6  ;;  %v1177_v12 = vmax.f32 %v967_v7, 0.0 }
 0x1ed   :  { %v1176_v10 = vmax.f32 %v962_v9, 0.0  ;;  %v2406_v11 = vpop.f32.mrb[28].mxu1 }
 0x1ee   :  { %v977_v13 = vadd.f32 %v2406_v11, %v3216_v55  ;;  %v971_v14 = vpop.f32.mrb[29].mxu1 }
 0x1ef   :  { %v972_v15 = vadd.f32 %v3216_v55, %v971_v14  ;;  %2529 = vmatprep.mubr.f32.mxu0 %v1176_v10 }
 0x1f0   :  { %2530 = vmatmul.mubr.f32.gmra.mrb[90].mxu0 %v1177_v12  ;;  %v1179_v18 = vmax.f32 %v977_v13, 0.0 }
 0x1f1   :  { %v1178_v16 = vmax.f32 %v972_v15, 0.0  ;;  %v2409_v17 = vpop.f32.mrb[30].mxu1 }
 0x1f2   :  { %v987_v19 = vadd.f32 %v2409_v17, %v3216_v55  ;;  %v981_v20 = vpop.f32.mrb[31].mxu1 }
 0x1f3   :  { %v982_v21 = vadd.f32 %v3216_v55, %v981_v20  ;;  %2532 = vmatprep.mubr.f32.mxu0 %v1178_v16 }
 0x1f4   :  { %2533 = vmatmul.mubr.f32.gmra.mrb[92].mxu0 %v1179_v18  ;;  %v1181_v24 = vmax.f32 %v987_v19, 0.0 }
 0x1f5   :  { %v1180_v22 = vmax.f32 %v982_v21, 0.0  ;;  %v2412_v23 = vpop.f32.mrb[32].mxu1 }
 0x1f6   :  { %v997_v25 = vadd.f32 %v2412_v23, %v3216_v55  ;;  %v991_v26 = vpop.f32.mrb[33].mxu1 }
 0x1f7   :  { %v992_v28 = vadd.f32 %v3216_v55, %v991_v26  ;;  %2535 = vmatprep.mubr.f32.mxu0 %v1180_v22 }
 0x1f8   :  { %2536 = vmatmul.mubr.f32.gmra.mrb[94].mxu0 %v1181_v24  ;;  %v1183_v31 = vmax.f32 %v997_v25, 0.0 }
 0x1f9   :  { %v1182_v29 = vmax.f32 %v992_v28, 0.0  ;;  %v2415_v30 = vpop.f32.mrb[34].mxu1 }
 0x1fa   :  { %v1007_v32 = vadd.f32 %v2415_v30, %v3216_v55  ;;  %v1001_v33 = vpop.f32.mrb[35].mxu1 }
 0x1fb   :  { %v1002_v34 = vadd.f32 %v3216_v55, %v1001_v33  ;;  %2538 = vmatprep.mubr.f32.mxu0 %v1182_v29 }
 0x1fc   :  { %2539 = vmatmul.mubr.f32.gmra.mrb[96].mxu0 %v1183_v31  ;;  %v1185_v37 = vmax.f32 %v1007_v32, 0.0 }
 0x1fd   :  { %v1184_v35 = vmax.f32 %v1002_v34, 0.0  ;;  %v2418_v36 = vpop.f32.mrb[36].mxu1 }
 0x1fe   :  { %v1017_v38 = vadd.f32 %v2418_v36, %v3216_v55  ;;  %v1011_v39 = vpop.f32.mrb[37].mxu1 }
 0x1ff   :  { %v1012_v40 = vadd.f32 %v3216_v55, %v1011_v39  ;;  %2541 = vmatprep.mubr.f32.mxu0 %v1184_v35 }
 0x200   :  { %2542 = vmatmul.mubr.f32.gmra.mrb[98].mxu0 %v1185_v37  ;;  %v1187_v43 = vmax.f32 %v1017_v38, 0.0 }
 0x201   :  { %v1186_v41 = vmax.f32 %v1012_v40, 0.0  ;;  %v2421_v42 = vpop.f32.mrb[38].mxu1 }
 0x202   :  { %v1027_v44 = vadd.f32 %v2421_v42, %v3216_v55  ;;  %v1021_v45 = vpop.f32.mrb[39].mxu1 }
 0x203   :  { %v1022_v46 = vadd.f32 %v3216_v55, %v1021_v45  ;;  %2544 = vmatprep.mubr.f32.mxu0 %v1186_v41 }
 0x204   :  { %2545 = vmatmul.mubr.f32.gmra.mrb[100].mxu0 %v1187_v43  ;;  %v1189_v49 = vmax.f32 %v1027_v44, 0.0 }
 0x205   :  { %v1188_v47 = vmax.f32 %v1022_v46, 0.0  ;;  %v2424_v48 = vpop.f32.mrb[40].mxu1 }
 0x206   :  { %v1037_v50 = vadd.f32 %v2424_v48, %v3216_v55  ;;  %v1031_v51 = vpop.f32.mrb[41].mxu1 }
 0x207   :  { %v1032_v52 = vadd.f32 %v3216_v55, %v1031_v51  ;;  %2547 = vmatprep.mubr.f32.mxu0 %v1188_v47 }
 0x208   :  { %2548 = vmatmul.mubr.f32.gmra.mrb[102].mxu0 %v1189_v49  ;;  %v1191_v56 = vmax.f32 %v1037_v50, 0.0 }
 0x209   :  { %v1190_v53 = vmax.f32 %v1032_v52, 0.0  ;;  %v2427_v54 = vpop.f32.mrb[42].mxu1 }
 0x20a   :  { %v1047_v57 = vadd.f32 %v2427_v54, %v3216_v55  ;;  %v1041_v58 = vpop.f32.mrb[43].mxu1 }
 0x20b   :  { %v1042_v59 = vadd.f32 %v3216_v55, %v1041_v58  ;;  %2550 = vmatprep.mubr.f32.mxu0 %v1190_v53 }
 0x20c   :  { %2551 = vmatmul.mubr.f32.gmra.mrb[104].mxu0 %v1191_v56  ;;  %v1193_v62 = vmax.f32 %v1047_v57, 0.0 }
 0x20d   :  { %v1192_v60 = vmax.f32 %v1042_v59, 0.0  ;;  %v2430_v61 = vpop.f32.mrb[44].mxu1  ;;  %v3285_v59 = vld [vmem:[%s3336_s6] sm:$0xff]  ;;  %s2745_s6 = smov [#allocation2]  }
 0x20e   :  { %v1057_v27 = vadd.f32 %v2430_v61, %v3216_v55  ;;  %v1051_v63 = vpop.f32.mrb[45].mxu1  ;;  %2194 = vmatprep.mubr.f32.mxu1 %v3285_v59  ;;  %s1862_s25 = sshll.u32 %s2745_s6, 4  ;;  %s1863_s25 = int_to_ptr.vmem [resolvable:$true] %s1862_s25 }
 0x20f   :  { %v1052_v0 = vadd.f32 %v3216_v55, %v1051_v63  ;;  %2553 = vmatprep.mubr.f32.mxu0 %v1192_v60  ;;  %s2720_s26 = scalar_lea.vmem %s1863_s25, 64  ;;  %p2725_p1 = scmp.lt.s32.totalorder %s1863_s25, %s1863_s25 }
 0x210   :  { %2554 = vmatmul.mubr.f32.gmra.mrb[106].mxu0 %v1193_v62  ;;  %v1195_v3 = vmax.f32 %v1057_v27, 0.0  ;;  %p2721_p0 = scmp.ne.s32.totalorder %s1863_s25, %s2720_s26  ;;  %p2726_p2 = scmp.lt.s32.totalorder %s2720_s26, %s2720_s26 }
 0x211   :  { %v1194_v1 = vmax.f32 %v1052_v0, 0.0  ;;  %v2433_v2 = vpop.f32.mrb[46].mxu1 }
 0x212   :  { %v1067_v4 = vadd.f32 %v2433_v2, %v3216_v55  ;;  %v1061_v5 = vpop.f32.mrb[47].mxu1  ;;  %p2727_p3 = por %p2726_p2, %p2725_p1 }
 0x213   :  { %v1062_v6 = vadd.f32 %v3216_v55, %v1061_v5  ;;  %2556 = vmatprep.mubr.f32.mxu0 %v1194_v1 }
 0x214   :  { %2557 = vmatmul.mubr.f32.gmra.mrb[108].mxu0 %v1195_v3  ;;  %v1197_v9 = vmax.f32 %v1067_v4, 0.0  ;;  %p2728_p4 = pnand %p2727_p3, %p2721_p0 }
 0x215   :  { %v1196_v7 = vmax.f32 %v1062_v6, 0.0  ;;  %v2436_v8 = vpop.f32.mrb[48].mxu1 }
 0x216   :  { %v1077_v10 = vadd.f32 %v2436_v8, %v3216_v55  ;;  %v1071_v11 = vpop.f32.mrb[49].mxu1 }
 0x217   :  { %v1072_v12 = vadd.f32 %v3216_v55, %v1071_v11  ;;  %2559 = vmatprep.mubr.f32.mxu0 %v1196_v7 }
 0x218   :  { %2560 = vmatmul.mubr.f32.gmra.mrb[110].mxu0 %v1197_v9  ;;  %v1199_v15 = vmax.f32 %v1077_v10, 0.0 }
 0x219   :  { %v1198_v13 = vmax.f32 %v1072_v12, 0.0  ;;  %v2439_v14 = vpop.f32.mrb[50].mxu1 }
 0x21a   :  { %v1087_v16 = vadd.f32 %v2439_v14, %v3216_v55  ;;  %v1081_v17 = vpop.f32.mrb[51].mxu1 }
 0x21b   :  { %2562 = vmatprep.mubr.f32.mxu0 %v1198_v13  ;;  %v1082_v18 = vadd.f32 %v3216_v55, %v1081_v17 }
 0x21c   :  { %2563 = vmatmul.mubr.f32.gmra.mrb[112].mxu0 %v1199_v15  ;;  %v1201_v19 = vmax.f32 %v1087_v16, 0.0 }
 0x21d   :  { %v1200_v20 = vmax.f32 %v1082_v18, 0.0  ;;  %v2442_v21 = vpop.f32.mrb[52].mxu1 }
 0x21e   :  { %v1097_v22 = vadd.f32 %v2442_v21, %v3216_v55  ;;  %v1091_v23 = vpop.f32.mrb[53].mxu1 }
 0x21f   :  { %2565 = vmatprep.mubr.f32.mxu0 %v1200_v20  ;;  %v1092_v24 = vadd.f32 %v3216_v55, %v1091_v23 }
 0x220   :  { %2566 = vmatmul.mubr.f32.gmra.mrb[114].mxu0 %v1201_v19  ;;  %v1203_v25 = vmax.f32 %v1097_v22, 0.0 }
 0x221   :  { %v1202_v26 = vmax.f32 %v1092_v24, 0.0  ;;  %v2445_v28 = vpop.f32.mrb[54].mxu1 }
 0x222   :  { %v1107_v29 = vadd.f32 %v2445_v28, %v3216_v55  ;;  %v1101_v30 = vpop.f32.mrb[55].mxu1 }
 0x223   :  { %2568 = vmatprep.mubr.f32.mxu0 %v1202_v26  ;;  %v1102_v31 = vadd.f32 %v3216_v55, %v1101_v30 }
 0x224   :  { %2569 = vmatmul.mubr.f32.gmra.mrb[116].mxu0 %v1203_v25  ;;  %v1205_v32 = vmax.f32 %v1107_v29, 0.0 }
 0x225   :  { %v1204_v33 = vmax.f32 %v1102_v31, 0.0  ;;  %v2448_v34 = vpop.f32.mrb[56].mxu1 }
 0x226   :  { %v1117_v35 = vadd.f32 %v2448_v34, %v3216_v55  ;;  %v1111_v36 = vpop.f32.mrb[57].mxu1 }
 0x227   :  { %2571 = vmatprep.mubr.f32.mxu0 %v1204_v33  ;;  %v1112_v37 = vadd.f32 %v3216_v55, %v1111_v36 }
 0x228   :  { %2572 = vmatmul.mubr.f32.gmra.mrb[118].mxu0 %v1205_v32  ;;  %v1207_v38 = vmax.f32 %v1117_v35, 0.0 }
 0x229   :  { %v1206_v39 = vmax.f32 %v1112_v37, 0.0  ;;  %v2451_v40 = vpop.f32.mrb[58].mxu1 }
 0x22a   :  { %v1127_v41 = vadd.f32 %v2451_v40, %v3216_v55  ;;  %v1121_v42 = vpop.f32.mrb[59].mxu1 }
 0x22b   :  { %2574 = vmatprep.mubr.f32.mxu0 %v1206_v39  ;;  %v1122_v43 = vadd.f32 %v3216_v55, %v1121_v42 }
 0x22c   :  { %2575 = vmatmul.mubr.f32.gmra.mrb[120].mxu0 %v1207_v38  ;;  %v1209_v44 = vmax.f32 %v1127_v41, 0.0 }
 0x22d   :  { %v1208_v45 = vmax.f32 %v1122_v43, 0.0  ;;  %v2454_v46 = vpop.f32.mrb[60].mxu1 }
 0x22e   :  { %v1137_v47 = vadd.f32 %v2454_v46, %v3216_v55  ;;  %v1131_v48 = vpop.f32.mrb[61].mxu1 }
 0x22f   :  { %2577 = vmatprep.mubr.f32.mxu0 %v1208_v45  ;;  %v1132_v49 = vadd.f32 %v3216_v55, %v1131_v48 }
 0x230   :  { %2578 = vmatmul.mubr.f32.gmra.mrb[122].mxu0 %v1209_v44  ;;  %v1211_v50 = vmax.f32 %v1137_v47, 0.0 }
 0x231   :  { %v1210_v51 = vmax.f32 %v1132_v49, 0.0  ;;  %v2457_v52 = vpop.f32.mrb[62].mxu1 }
 0x232   :  { %v1147_v53 = vadd.f32 %v2457_v52, %v3216_v55  ;;  %v1141_v54 = vpop.f32.mrb[63].mxu1 }
 0x233   :  { %2580 = vmatprep.mubr.f32.mxu0 %v1210_v51  ;;  %v1142_v56 = vadd.f32 %v3216_v55, %v1141_v54 }
 0x234   :  { %2581 = vmatmul.mubr.f32.gmra.mrb[124].mxu0 %v1211_v50  ;;  %v1213_v57 = vmax.f32 %v1147_v53, 0.0 }
 0x235   :  { %v1212_v58 = vmax.f32 %v1142_v56, 0.0 }
 0x237   :  { %2583 = vmatprep.mubr.f32.mxu0 %v1212_v58 }
 0x238   :  { %2584 = vmatmul.mubr.f32.gmra.mrb[126].mxu0 %v1213_v57 }
 0x28f   :  { %v2492_v60 = vpop.f32.mrb[64].mxu0 }
 0x290   :  { %v1616_v61 = vmax.f32 %v2492_v60, 0.0  ;;  %v1296_v62 = vpop.f32.mrb[65].mxu0 }
 0x291   :  { %v1615_v27 = vmax.f32 %v1296_v62, 0.0 }
 0x293   :  { %v2656_v63 = vpack.c.bf16 %v1616_v61, %v1615_v27  ;;  %v2495_v0 = vpop.f32.mrb[66].mxu0 }
 0x294   :  { %v1618_v1 = vmax.f32 %v2495_v0, 0.0  ;;  %v1306_v55 = vpop.f32.mrb[67].mxu0 }
 0x295   :  { %v1617_v2 = vmax.f32 %v1306_v55, 0.0 }
 0x297   :  { %v2660_v3 = vpack.c.bf16 %v1618_v1, %v1617_v2  ;;  %v2498_v4 = vpop.f32.mrb[68].mxu0 }
 0x298   :  { %v1620_v5 = vmax.f32 %v2498_v4, 0.0  ;;  %v1316_v6 = vpop.f32.mrb[69].mxu0 }
 0x299   :  { %v1619_v7 = vmax.f32 %v1316_v6, 0.0 }
 0x29b   :  { %v2664_v8 = vpack.c.bf16 %v1620_v5, %v1619_v7  ;;  %v2501_v9 = vpop.f32.mrb[70].mxu0 }
 0x29c   :  { %v1622_v10 = vmax.f32 %v2501_v9, 0.0  ;;  %v1326_v11 = vpop.f32.mrb[71].mxu0 }
 0x29d   :  { %v1621_v12 = vmax.f32 %v1326_v11, 0.0 }
 0x29f   :  { %v3288_v13 = vpack.c.bf16 %v1622_v10, %v1621_v12  ;;  %v2504_v14 = vpop.f32.mrb[72].mxu0 }
 0x2a0   :  { %v1624_v15 = vmax.f32 %v2504_v14, 0.0  ;;  %v1336_v16 = vpop.f32.mrb[73].mxu0 }
 0x2a1   :  { %v1623_v17 = vmax.f32 %v1336_v16, 0.0 }
 0x2a3   :  { %v3290_v18 = vpack.c.bf16 %v1624_v15, %v1623_v17  ;;  %v2507_v19 = vpop.f32.mrb[74].mxu0 }
 0x2a4   :  { %v1626_v20 = vmax.f32 %v2507_v19, 0.0  ;;  %v1346_v21 = vpop.f32.mrb[75].mxu0 }
 0x2a5   :  { %v1625_v22 = vmax.f32 %v1346_v21, 0.0 }
 0x2a7   :  { %v3292_v23 = vpack.c.bf16 %v1626_v20, %v1625_v22  ;;  %v2510_v24 = vpop.f32.mrb[76].mxu0 }
 0x2a8   :  { %v1628_v25 = vmax.f32 %v2510_v24, 0.0  ;;  %v1356_v26 = vpop.f32.mrb[77].mxu0 }
 0x2a9   :  { %v1627_v28 = vmax.f32 %v1356_v26, 0.0 }
 0x2ab   :  { %v3294_v29 = vpack.c.bf16 %v1628_v25, %v1627_v28  ;;  %v2513_v30 = vpop.f32.mrb[78].mxu0 }
 0x2ac   :  { %v1630_v31 = vmax.f32 %v2513_v30, 0.0  ;;  %v1366_v32 = vpop.f32.mrb[79].mxu0 }
 0x2ad   :  { %v1629_v33 = vmax.f32 %v1366_v32, 0.0 }
 0x2af   :  { %v3296_v34 = vpack.c.bf16 %v1630_v31, %v1629_v33  ;;  %v2516_v35 = vpop.f32.mrb[80].mxu0 }
 0x2b0   :  { %v1632_v36 = vmax.f32 %v2516_v35, 0.0  ;;  %v1376_v37 = vpop.f32.mrb[81].mxu0 }
 0x2b1   :  { %v1631_v38 = vmax.f32 %v1376_v37, 0.0 }
 0x2b3   :  { %v2654_v39 = vpack.c.bf16 %v1632_v36, %v1631_v38  ;;  %v2519_v40 = vpop.f32.mrb[82].mxu0 }
 0x2b4   :  { %v1634_v41 = vmax.f32 %v2519_v40, 0.0  ;;  %v1386_v42 = vpop.f32.mrb[83].mxu0 }
 0x2b5   :  { %2655 = vmatprep.subr.bf16.mxu1 %v2654_v39  ;;  %v1633_v43 = vmax.f32 %v1386_v42, 0.0 }
 0x2b6   :  { %2657 = vmatpush3.bf16.xpose.msra.mxu1 %v2656_v63 }
 0x2b7   :  { %v2658_v44 = vpack.c.bf16 %v1634_v41, %v1633_v43  ;;  %v2522_v45 = vpop.f32.mrb[84].mxu0 }
 0x2b8   :  { %v1636_v46 = vmax.f32 %v2522_v45, 0.0  ;;  %v1396_v47 = vpop.f32.mrb[85].mxu0 }
 0x2b9   :  { %2659 = vmatprep.subr.bf16.mxu1 %v2658_v44  ;;  %v1635_v48 = vmax.f32 %v1396_v47, 0.0 }
 0x2bb   :  { %v2662_v49 = vpack.c.bf16 %v1636_v46, %v1635_v48  ;;  %v2525_v50 = vpop.f32.mrb[86].mxu0 }
 0x2bc   :  { %v1638_v51 = vmax.f32 %v2525_v50, 0.0  ;;  %v1406_v52 = vpop.f32.mrb[87].mxu0 }
 0x2bd   :  { %v1637_v53 = vmax.f32 %v1406_v52, 0.0 }
 0x2be   :  { %2661 = vmatpush3.bf16.xpose.msra.mxu1 %v2660_v3 }
 0x2bf   :  { %2663 = vmatprep.subr.bf16.mxu1 %v2662_v49  ;;  %v2666_v54 = vpack.c.bf16 %v1638_v51, %v1637_v53  ;;  %v2528_v56 = vpop.f32.mrb[88].mxu0 }
 0x2c0   :  { %v1640_v57 = vmax.f32 %v2528_v56, 0.0  ;;  %v1416_v58 = vpop.f32.mrb[89].mxu0 }
 0x2c1   :  { %v1639_v60 = vmax.f32 %v1416_v58, 0.0 }
 0x2c3   :  { %v2670_v61 = vpack.c.bf16 %v1640_v57, %v1639_v60  ;;  %v2531_v62 = vpop.f32.mrb[90].mxu0 }
 0x2c4   :  { %v1642_v27 = vmax.f32 %v2531_v62, 0.0  ;;  %v1426_v63 = vpop.f32.mrb[91].mxu0 }
 0x2c5   :  { %v1641_v0 = vmax.f32 %v1426_v63, 0.0 }
 0x2c6   :  { %2665 = vmatpush3.bf16.xpose.msra.mxu1 %v2664_v8 }
 0x2c7   :  { %2667 = vmatprep.subr.bf16.mxu1 %v2666_v54  ;;  %v2674_v1 = vpack.c.bf16 %v1642_v27, %v1641_v0  ;;  %v2534_v55 = vpop.f32.mrb[92].mxu0 }
 0x2c8   :  { %v1644_v2 = vmax.f32 %v2534_v55, 0.0  ;;  %v1436_v4 = vpop.f32.mrb[93].mxu0 }
 0x2c9   :  { %v1643_v5 = vmax.f32 %v1436_v4, 0.0 }
 0x2cb   :  { %v2678_v6 = vpack.c.bf16 %v1644_v2, %v1643_v5  ;;  %v2537_v3 = vpop.f32.mrb[94].mxu0 }
 0x2cc   :  { %v1646_v7 = vmax.f32 %v2537_v3, 0.0  ;;  %v1446_v9 = vpop.f32.mrb[95].mxu0 }
 0x2cd   :  { %v1645_v10 = vmax.f32 %v1446_v9, 0.0 }
 0x2ce   :  { %2669 = vmatpush3.bf16.xpose.msra.mxu1 %v3288_v13 }
 0x2cf   :  { %2671 = vmatprep.subr.bf16.mxu1 %v2670_v61  ;;  %v2682_v11 = vpack.c.bf16 %v1646_v7, %v1645_v10  ;;  %v2540_v12 = vpop.f32.mrb[96].mxu0 }
 0x2d0   :  { %v1648_v14 = vmax.f32 %v2540_v12, 0.0  ;;  %v1456_v15 = vpop.f32.mrb[97].mxu0 }
 0x2d1   :  { %v1647_v16 = vmax.f32 %v1456_v15, 0.0 }
 0x2d3   :  { %v2688_v8 = vpack.c.bf16 %v1648_v14, %v1647_v16  ;;  %v2543_v17 = vpop.f32.mrb[98].mxu0 }
 0x2d4   :  { %v1650_v19 = vmax.f32 %v2543_v17, 0.0  ;;  %v1466_v20 = vpop.f32.mrb[99].mxu0 }
 0x2d5   :  { %v1649_v21 = vmax.f32 %v1466_v20, 0.0 }
 0x2d6   :  { %2673 = vmatpush3.bf16.xpose.msra.mxu1 %v3290_v18 }
 0x2d7   :  { %2675 = vmatprep.subr.bf16.mxu1 %v2674_v1  ;;  %v2692_v22 = vpack.c.bf16 %v1650_v19, %v1649_v21  ;;  %v2546_v24 = vpop.f32.mrb[100].mxu0 }
 0x2d8   :  { %v1652_v25 = vmax.f32 %v2546_v24, 0.0  ;;  %v1476_v26 = vpop.f32.mrb[101].mxu0 }
 0x2d9   :  { %v1651_v28 = vmax.f32 %v1476_v26, 0.0 }
 0x2db   :  { %v3300_v13 = vpack.c.bf16 %v1652_v25, %v1651_v28  ;;  %v2549_v30 = vpop.f32.mrb[102].mxu0 }
 0x2dc   :  { %v1654_v31 = vmax.f32 %v2549_v30, 0.0  ;;  %v1486_v32 = vpop.f32.mrb[103].mxu0 }
 0x2dd   :  { %v1653_v33 = vmax.f32 %v1486_v32, 0.0 }
 0x2de   :  { %2677 = vmatpush3.bf16.xpose.msra.mxu1 %v3292_v23 }
 0x2df   :  { %2679 = vmatprep.subr.bf16.mxu1 %v2678_v6  ;;  %v3303_v35 = vpack.c.bf16 %v1654_v31, %v1653_v33  ;;  %v2552_v36 = vpop.f32.mrb[104].mxu0 }
 0x2e0   :  { %v1656_v37 = vmax.f32 %v2552_v36, 0.0  ;;  %v1496_v18 = vpop.f32.mrb[105].mxu0 }
 0x2e1   :  { %v1655_v38 = vmax.f32 %v1496_v18, 0.0 }
 0x2e3   :  { %v3305_v39 = vpack.c.bf16 %v1656_v37, %v1655_v38  ;;  %v2555_v40 = vpop.f32.mrb[106].mxu0  ;;  %v2744_v37 = vmov 1966171168   ;;  %v1831_v38 = vlaneseq }
 0x2e4   :  { %v1658_v41 = vmax.f32 %v2555_v40, 0.0  ;;  %v1506_v42 = vpop.f32.mrb[107].mxu0  ;;  %v1829_v18 = vunpack.c.l.s4 %v2744_v37 }
 0x2e5   :  { %v1657_v43 = vmax.f32 %v1506_v42, 0.0  ;;  %v1832_v40 = vshrl.u32 %v1831_v38, 7  ;;  %vm1853_vm1 = vcmp.lt.s32.totalorder %v1831_v38, 512 }
 0x2e6   :  { %2681 = vmatpush3.bf16.xpose.msra.mxu1 %v3294_v29 }
 0x2e7   :  { %v3308_v44 = vpack.c.bf16 %v1658_v41, %v1657_v43  ;;  %v2558_v45 = vpop.f32.mrb[108].mxu0  ;;  %2683 = vmatprep.subr.bf16.mxu1 %v2682_v11 }
 0x2e8   :  { %v1660_v23 = vmax.f32 %v2558_v45, 0.0  ;;  %v1516_v46 = vpop.f32.mrb[109].mxu0 }
 0x2e9   :  { %v1659_v47 = vmax.f32 %v1516_v46, 0.0 }
 0x2eb   :  { %v2712_v48 = vpack.c.bf16 %v1660_v23, %v1659_v47  ;;  %v2561_v49 = vpop.f32.mrb[110].mxu0 }
 0x2ec   :  { %v1662_v50 = vmax.f32 %v2561_v49, 0.0  ;;  %v1526_v51 = vpop.f32.mrb[111].mxu0 }
 0x2ed   :  { %v1661_v52 = vmax.f32 %v1526_v51, 0.0 }
 0x2ee   :  { %2685 = vmatpush3.bf16.xpose.msra.mxu1 %v3296_v34 }
 0x2ef   :  { %v2716_v53 = vpack.c.bf16 %v1662_v50, %v1661_v52  ;;  %v2564_v54 = vpop.f32.mrb[112].mxu0 }
 0x2f0   :  { %v1664_v56 = vmax.f32 %v2564_v54, 0.0  ;;  %v1536_v57 = vpop.f32.mrb[113].mxu0 }
 0x2f1   :  { %v1663_v58 = vmax.f32 %v1536_v57, 0.0 }
 0x2f3   :  { %v2686_v29 = vpack.c.bf16 %v1664_v56, %v1663_v58  ;;  %v2567_v60 = vpop.f32.mrb[114].mxu0 }
 0x2f4   :  { %v1666_v61 = vmax.f32 %v2567_v60, 0.0  ;;  %v1546_v62 = vpop.f32.mrb[115].mxu0 }
 0x2f5   :  { %2687 = vmatprep.subr.bf16.mxu1 %v2686_v29  ;;  %2195 = vmatmul.mubr.f32.vlgmr.msra.gmra.mrb[64].mxu1 %v3285_v59  ;;  %v1665_v27 = vmax.f32 %v1546_v62, 0.0 }
 0x2f6   :  { %2689 = vmatpush3.bf16.xpose.msra.mxu1 %v2688_v8  ;;  %2228 = vmatprep.mubr.f32.mxu1 %v3285_v59 }
 0x2f7   :  { %v2690_v63 = vpack.c.bf16 %v1666_v61, %v1665_v27  ;;  %v2570_v0 = vpop.f32.mrb[116].mxu0 }
 0x2f8   :  { %v1668_v1 = vmax.f32 %v2570_v0, 0.0  ;;  %v1556_v34 = vpop.f32.mrb[117].mxu0 }
 0x2f9   :  { %2691 = vmatprep.subr.bf16.mxu1 %v2690_v63  ;;  %v1667_v55 = vmax.f32 %v1556_v34, 0.0 }
 0x2fb   :  { %v2694_v2 = vpack.c.bf16 %v1668_v1, %v1667_v55  ;;  %v2573_v4 = vpop.f32.mrb[118].mxu0 }
 0x2fc   :  { %v1670_v5 = vmax.f32 %v2573_v4, 0.0  ;;  %v1566_v6 = vpop.f32.mrb[119].mxu0 }
 0x2fd   :  { %v1669_v3 = vmax.f32 %v1566_v6, 0.0 }
 0x2fe   :  { %2693 = vmatpush3.bf16.xpose.msra.mxu1 %v2692_v22 }
 0x2ff   :  { %2695 = vmatprep.subr.bf16.mxu1 %v2694_v2  ;;  %v2698_v7 = vpack.c.bf16 %v1670_v5, %v1669_v3  ;;  %v2576_v9 = vpop.f32.mrb[120].mxu0 }
 0x300   :  { %v1672_v10 = vmax.f32 %v2576_v9, 0.0  ;;  %v1576_v11 = vpop.f32.mrb[121].mxu0 }
 0x301   :  { %v1671_v12 = vmax.f32 %v1576_v11, 0.0 }
 0x303   :  { %v2702_v14 = vpack.c.bf16 %v1672_v10, %v1671_v12  ;;  %v2579_v15 = vpop.f32.mrb[122].mxu0 }
 0x304   :  { %v1674_v16 = vmax.f32 %v2579_v15, 0.0  ;;  %v1586_v8 = vpop.f32.mrb[123].mxu0 }
 0x305   :  { %v1673_v17 = vmax.f32 %v1586_v8, 0.0 }
 0x306   :  { %2697 = vmatpush3.bf16.xpose.msra.mxu1 %v3300_v13 }
 0x307   :  { %2699 = vmatprep.subr.bf16.mxu1 %v2698_v7  ;;  %v2706_v19 = vpack.c.bf16 %v1674_v16, %v1673_v17  ;;  %v2582_v20 = vpop.f32.mrb[124].mxu0 }
 0x308   :  { %v1676_v21 = vmax.f32 %v2582_v20, 0.0  ;;  %v1596_v24 = vpop.f32.mrb[125].mxu0 }
 0x309   :  { %v1675_v25 = vmax.f32 %v1596_v24, 0.0 }
 0x30b   :  { %v2710_v22 = vpack.c.bf16 %v1676_v21, %v1675_v25  ;;  %v2585_v26 = vpop.f32.mrb[126].mxu0 }
 0x30c   :  { %v1678_v28 = vmax.f32 %v2585_v26, 0.0  ;;  %v1606_v30 = vpop.f32.mrb[127].mxu0 }
 0x30d   :  { %v1677_v31 = vmax.f32 %v1606_v30, 0.0 }
 0x30e   :  { %2701 = vmatpush3.bf16.xpose.msra.mxu1 %v3303_v35  ;;  %v1830_v35 = vunpack.c.0.s8 %v1829_v18 }
 0x30f   :  { %2703 = vmatprep.subr.bf16.mxu1 %v2702_v14  ;;  %v2714_v32 = vpack.c.bf16 %v1678_v28, %v1677_v31 }
 0x310   :  { %v1833_v41 = vsub.s32 %v1830_v35, %v1832_v40 }
 0x316   :  { %2705 = vmatpush3.bf16.xpose.msra.mxu1 %v3305_v39 }
 0x317   :  { %2707 = vmatprep.subr.bf16.mxu1 %v2706_v19 }
 0x31e   :  { %2709 = vmatpush3.bf16.xpose.msra.mxu1 %v3308_v44 }
 0x31f   :  { %2711 = vmatprep.subr.bf16.mxu1 %v2710_v22 }
 0x326   :  { %2713 = vmatpush3.bf16.xpose.msra.mxu1 %v2712_v48 }
 0x327   :  { %2715 = vmatprep.subr.bf16.mxu1 %v2714_v32 }
 0x32e   :  { %2717 = vmatpush3.bf16.xpose.msra.mxu1 %v2716_v53 }
 0x335   :  { %2229 = vmatmul.mubr.f32.vlgmr.msra.gmra.mrb[66].mxu1 %v3285_v59 }
 0x3c8   :  { %v1746_v13 = vpop.f32.mrb[64].mxu1 }
 0x3c9   :  { %v1748_v33 = vpop.f32.mrb[65].mxu1 }
 0x3ca   :  { %v1826_v36 = vcombine.low %v1746_v13, %v1748_v33 }
 0x3cc   :  { %v1834_v45 = vrot.slane %v1826_v36, %v1833_v41 }
 0x408   :  { %v1817_v42 = vpop.f32.mrb[66].mxu1 }
 0x409   :  { %v1819_v39 = vpop.f32.mrb[67].mxu1 }
 0x40a   :  { %v1827_v43 = vcombine.low %v1817_v42, %v1819_v39 }
 0x40c   :  { %v1841_v44 = vrot.slane %v1827_v43, %v1833_v41 }
 0x40e   :  { %v1842_v23 = vcombine.low %v1834_v45, %v1841_v44 }
 0x410   :  { %v1849_v46 = vrot.slane %v1842_v23, %v1833_v41 }
 0x412   :  { %1855 = vst.msk [vmem:[#allocation2] sm:$0xf] %vm1853_vm1, %v1849_v46 }
 0x413   :  { %2731 = shalt.err (!%p2728_p4)
}
 0x414   :  { %s2732_s29 = scalar_lea.hbm %s3337_s7, 64 }
 0x415   :  { %p2733_p5 = scmp.ne.s32.totalorder %s3337_s7, %s2732_s29  ;;  %p2736_p6 = scmp.lt.u32.totalorder %s2732_s29, %s3337_s7 }
 0x417   :  { %p2738_p7 = pnand %p2736_p6, %p2733_p5 }
 0x419   :  { %2741 = shalt.err (!%p2738_p7)
}
 0x41a   :  { %1865 = dma.vmem_to_hbm [thread:$0]  %s1863_s25, 64, %s3337_s7, [#allocation3]  }
 0x41b   :  { %2742 = dma.done.wait [#allocation3], 64  }
 0x41c   :  { %2743 = vsyncadd [#allocation3], 4294967232 }
 0x41d   :  { %1869 = vsyncpa [#allocation3], 1 }

</bundles_post_ra>
